<compile_context>
chip_gen: v6e
topology: v6e:2x2x1
jax: 0.10.0
libtpu: 0.0.40
codegen_flags: <defaults>
</compile_context>

<pallas_src>
import numpy as np
import jax
import jax.numpy as jnp
from jax import lax
from jax.experimental import pallas as pl
from jax.experimental.pallas import tpu as pltpu


# ----------------------------------------------------------------------------
# small helpers
# ----------------------------------------------------------------------------

def _round_up(v, m):
    return (v + m - 1) // m * m


def _choose_m_tile(M1, S1):
    """Pad flattened positions to a 128 multiple; pick a lane tile made of whole samples."""
    Mp = _round_up(M1, 128)
    for t in (1024, 512, 256, 128):
        if Mp % t == 0 and t % S1 == 0:
            return Mp, t
    # Fallback: single tile (rolls always stay in-tile).  Fine for small problems.
    return Mp, Mp


def im2col3d_T(x, *, K, stride, pad):
    """(N,C,D,H,W) -> transposed im2col (C*K^3, N*OD*OH*OW); rows ordered (c,kd,kh,kw)."""
    N, C, D, H, W = x.shape
    xp = jnp.pad(x, ((0, 0), (0, 0), (pad, pad), (pad, pad), (pad, pad)))
    OD = (D + 2 * pad - K) // stride + 1
    OH = (H + 2 * pad - K) // stride + 1
    OW = (W + 2 * pad - K) // stride + 1
    cols = []
    for kd in range(K):
        for kh in range(K):
            for kw in range(K):
                cols.append(xp[:, :,
                               kd:kd + stride * OD:stride,
                               kh:kh + stride * OH:stride,
                               kw:kw + stride * OW:stride])
    p = jnp.stack(cols, axis=0)                       # (K^3, N, C, OD, OH, OW)
    A = p.transpose(2, 0, 1, 3, 4, 5).reshape(C * K ** 3, N * OD * OH * OW)
    return A, (OD, OH, OW)


# ----------------------------------------------------------------------------
# fused Pallas kernel: down GEMM (+ReLU) -> 27-slab build -> up GEMM -> GN moments
# ----------------------------------------------------------------------------

def _make_fused_kernel(deltas, n_phases, Co, inv_center_cnt):
    def kernel(w1_ref, w2_ref, a1_ref, m27_ref, srow_ref, scol_ref,
               y_ref, s_ref, q_ref):
        # ---- down: Conv3d as GEMM; ReLU fused into the epilogue (LeakyReLU was
        #      hoisted to the source tensor, before im2col duplication) ----
        h = jnp.dot(w1_ref[...], a1_ref[...], preferred_element_type=jnp.float32)
        h = jnp.maximum(h, 0.0).astype(jnp.bfloat16)              # (Ci, tm)

        # ---- build the 27 unique shifted/masked slabs of h entirely on-chip ----
        slabs = []
        for si, delta in enumerate(deltas):
            r = h if delta == 0 else jnp.roll(h, -delta, axis=1)  # lane shift
            slabs.append(r * m27_ref[si])                         # (Ci, tm) bf16
        a2 = jnp.concatenate(slabs, axis=0)                       # (27*Ci, tm)

        # ---- up: all 8 sub-pixel phases as ONE dense 128-row GEMM ----
        y = jnp.dot(w2_ref[...], a2, preferred_element_type=jnp.float32)  # (8*Co, tm)
        y_ref[...] = y.astype(y_ref.dtype)                        # bf16 writeback

        # ---- GroupNorm moments reduced in-kernel to (Co, batch) per tile ----
        ysum = y[0:Co]
        for p in range(1, n_phases):
            ysum = ysum + y[p * Co:(p + 1) * Co]                  # (Co, tm)
        scol = scol_ref[...]                                      # (tm, NB) f32 0/1
        srow = srow_ref[...]                                      # (NB, tm) f32 0/1
        s_all = jnp.dot(ysum, scol, preferred_element_type=jnp.float32)    # (Co, NB)
        # centering shift (~per-(channel,sample) mean) kills E[y^2]-E[y]^2 cancellation
        c_all = s_all * inv_center_cnt                            # (Co, NB)
        c_map = jnp.dot(c_all, srow, preferred_element_type=jnp.float32)   # (Co, tm)
        q_lane = None
        for p in range(n_phases):
            d = y[p * Co:(p + 1) * Co] - c_map
            q_lane = d * d if q_lane is None else q_lane + d * d
        q_all = jnp.dot(q_lane, scol, preferred_element_type=jnp.float32)  # (Co, NB)
        s_ref[0] = s_all
        q_ref[0] = q_all
    return kernel


# ----------------------------------------------------------------------------
# forward pass
# ----------------------------------------------------------------------------

def unet_innermost_forward(x, w_down, w_up, gamma, beta, *, num_groups=16, eps=1e-5):
    """UnetSkipConnectionBlock3d(outer_nc, inner_nc, innermost=True).forward(x)."""
    NB, Cin, D, H, Wsp = x.shape
    Ci = w_down.shape[0]          # inner_nc
    Co = w_up.shape[1]            # outer_nc
    K = 4
    G = num_groups
    assert Co % G == 0
    Cg = Co // G

    # ---- hoisted source activation (LeakyReLU 0.2), then transposed im2col ----
    xa = jnp.where(x > 0, x, 0.2 * x).astype(jnp.bfloat16)
    A1, (OD, OH, OW) = im2col3d_T(xa, K=K, stride=2, pad=1)       # (Cin*64, M1)
    S1 = OD * OH * OW
    M1 = NB * S1
    Mp, tm = _choose_m_tile(M1, S1)
    n_m = Mp // tm
    if Mp != M1:
        A1 = jnp.pad(A1, ((0, 0), (0, Mp - M1)))

    W1 = w_down.reshape(Ci, Cin * K ** 3).astype(jnp.bfloat16)    # (Ci, Cin*64)

    # ---- combined 8-phase / 27-shift ConvTranspose weight (block-sparse-as-dense) ----
    shifts = [(sd, sh, sw) for sd in range(3) for sh in range(3) for sw in range(3)]
    phases = [(rd, rh, rw) for rd in range(2) for rh in range(2) for rw in range(2)]
    deltas = [(sd - 1) * OH * OW + (sh - 1) * OW + (sw - 1) for (sd, sh, sw) in shifts]
    kd_i = np.zeros((8, 27), np.int32)
    kh_i = np.zeros((8, 27), np.int32)
    kw_i = np.zeros((8, 27), np.int32)
    v_ps = np.zeros((8, 27), np.float32)
    for pi, (rd, rh, rw) in enumerate(phases):
        for si, (sd, sh, sw) in enumerate(shifts):
            td, th, tw = sd - rd, sh - rh, sw - rw
            if 0 <= td <= 1 and 0 <= th <= 1 and 0 <= tw <= 1:
                v_ps[pi, si] = 1.0
                kd_i[pi, si] = 3 - 2 * td - rd
                kh_i[pi, si] = 3 - 2 * th - rh
                kw_i[pi, si] = 3 - 2 * tw - rw
    w_sel = w_up[:, :, kd_i, kh_i, kw_i] * jnp.asarray(v_ps)[None, None]   # (Ci,Co,8,27)
    W_all = w_sel.transpose(2, 1, 3, 0).reshape(8 * Co, 27 * Ci).astype(jnp.bfloat16)

    # ---- static lane masks: slab validity (27) + per-sample membership ----
    lane = np.arange(Mp)
    valid = lane < M1
    samp = lane // S1
    pos = lane % S1
    dc = pos // (OH * OW)
    hc = (pos // OW) % OH
    wc = pos % OW
    m27_np = np.zeros((27, 1, Mp), np.float32)
    for si, (sd, sh, sw) in enumerate(shifts):
        dd, dh, dw = sd - 1, sh - 1, sw - 1
        ok = (valid & (dc + dd >= 0) & (dc + dd < OD)
              & (hc + dh >= 0) & (hc + dh < OH)
              & (wc + dw >= 0) & (wc + dw < OW))
        m27_np[si, 0] = ok
    srow_np = np.stack([(samp == n) & valid for n in range(NB)]).astype(np.float32)
    lane_counts = srow_np.reshape(NB, n_m, tm).sum(axis=2).T                # (n_m, NB)

    m27 = jnp.asarray(m27_np, jnp.bfloat16)
    srow = jnp.asarray(srow_np, jnp.float32)          # (NB, Mp)
    scol = jnp.asarray(srow_np.T, jnp.float32)        # (Mp, NB)

    kernel = _make_fused_kernel(deltas, 8, Co, 1.0 / float(8 * S1))
    y_all, s_part, q_part = pl.pallas_call(
        kernel,
        out_shape=(jax.ShapeDtypeStruct((8 * Co, Mp), jnp.bfloat16),
                   jax.ShapeDtypeStruct((n_m, Co, NB), jnp.float32),
                   jax.ShapeDtypeStruct((n_m, Co, NB), jnp.float32)),
        grid=(n_m,),
        in_specs=[
            pl.BlockSpec((Ci, Cin * K ** 3), lambda m: (0, 0)),     # W1 resident
            pl.BlockSpec((8 * Co, 27 * Ci), lambda m: (0, 0)),      # W_all resident
            pl.BlockSpec((Cin * K ** 3, tm), lambda m: (0, m)),     # A1 tile
            pl.BlockSpec((27, 1, tm), lambda m: (0, 0, m)),         # slab masks
            pl.BlockSpec((NB, tm), lambda m: (0, m)),               # sample rows
            pl.BlockSpec((tm, NB), lambda m: (m, 0)),               # sample cols
        ],
        out_specs=(
            pl.BlockSpec((8 * Co, tm), lambda m: (0, m)),
            pl.BlockSpec((1, Co, NB), lambda m: (m, 0, 0)),
            pl.BlockSpec((1, Co, NB), lambda m: (m, 0, 0)),
        ),
        compiler_params=pltpu.CompilerParams(
            dimension_semantics=("parallel",),
            vmem_limit_bytes=32 * 1024 * 1024),
    )(W1, W_all, A1, m27, srow, scol)

    # ---- GroupNorm finalize: tiny per-(group,sample) scalars, Chan-style combine ----
    cnt_p = jnp.asarray(8.0 * lane_counts, jnp.float32)[:, None, :]        # (T,1,NB)
    mean_p = s_part / jnp.maximum(cnt_p, 1.0)                              # (T,Co,NB)
    c_p = s_part * (1.0 / float(8 * S1))                                   # kernel's center
    m2_p = q_part - cnt_p * (mean_p - c_p) ** 2                            # centered 2nd moments
    cnt_tot = float(Cg * 8 * S1)
    s_g = s_part.reshape(n_m, G, Cg, NB).sum(axis=(0, 2))                  # (G,NB)
    mean_g = s_g / cnt_tot
    mean_gb = jnp.repeat(mean_g, Cg, axis=0)[None]                         # (1,Co,NB)
    M2_g = (m2_p + cnt_p * (mean_p - mean_gb) ** 2).reshape(n_m, G, Cg, NB).sum(axis=(0, 2))
    var = jnp.maximum(M2_g / cnt_tot, 0.0)
    inv = lax.rsqrt(var + eps)                                             # (G,NB)
    scale = gamma[:, None] * jnp.repeat(inv, Cg, axis=0)                   # (Co,NB)
    shift = beta[:, None] - jnp.repeat(mean_g, Cg, axis=0) * scale         # (Co,NB)

    # ---- affine + sub-pixel interleave + skip concat (one fused XLA pass) ----
    y = y_all[:, :M1].astype(jnp.float32).reshape(8, Co, NB, S1)
    yn = y * scale[None, :, :, None] + shift[None, :, :, None]
    y8 = yn.reshape(2, 2, 2, Co, NB, OD, OH, OW)
    yout = y8.transpose(4, 3, 5, 0, 6, 1, 7, 2).reshape(NB, Co, 2 * OD, 2 * OH, 2 * OW)
    return jnp.concatenate([x, yout.astype(x.dtype)], axis=1)


# ----------------------------------------------------------------------------
# Pure-JAX reference (for numerical verification)
# ----------------------------------------------------------------------------

def reference_forward(x, w_down, w_up, gamma, beta, num_groups=16, eps=1e-5):
    lrelu = jnp.where(x > 0, x, 0.2 * x)
    h = lax.conv_general_dilated(
        lrelu, w_down, window_strides=(2, 2, 2), padding=((1, 1),) * 3,
        dimension_numbers=("NCDHW", "OIDHW", "NCDHW"))
    hr = jnp.maximum(h, 0.0)
    w_conv = jnp.flip(w_up, axis=(2, 3, 4)).transpose(1, 0, 2, 3, 4)
    y = lax.conv_general_dilated(
        hr, w_conv, window_strides=(1, 1, 1), padding=((2, 2),) * 3,
        lhs_dilation=(2, 2, 2), dimension_numbers=("NCDHW", "OIDHW", "NCDHW"))
    Nn, C, Dd, Hh, Ww = y.shape
    G = num_groups
    yr = y.reshape(Nn, G, (C // G) * Dd * Hh * Ww)
    mean = yr.mean(-1, keepdims=True)
    var = ((yr - mean) ** 2).mean(-1, keepdims=True)
    yn = ((yr - mean) / jnp.sqrt(var + eps)).reshape(Nn, C, Dd, Hh, Ww)
    yn = yn * gamma[None, :, None, None, None] + beta[None, :, None, None, None]
    return jnp.concatenate([x, yn], axis=1)


# ----------------------------------------------------------------------------
# Main
# ----------------------------------------------------------------------------

if __name__ == "__main__":
    # Innermost block: input_nc = outer_nc = 16 (divisible by 16 for GroupNorm(16, .)),
    # inner_nc = 32, spatial 8^3, batch 2.
    N, input_nc, outer_nc, inner_nc = 2, 16, 16, 32
    D = H = W = 8
    KSZ = 4

    key = jax.random.PRNGKey(0)
    k1, k2, k3, k4, k5 = jax.random.split(key, 5)
    x = jax.random.normal(k1, (N, input_nc, D, H, W), jnp.float32)
    # Conv3d weight: (out_c, in_c, kD, kH, kW); ConvTranspose3d: (in_c, out_c, kD, kH, kW)
    w_down = 0.05 * jax.random.normal(k2, (inner_nc, input_nc, KSZ, KSZ, KSZ), jnp.float32)
    w_up = 0.05 * jax.random.normal(k3, (inner_nc, outer_nc, KSZ, KSZ, KSZ), jnp.float32)
    gamma = 1.0 + 0.1 * jax.random.normal(k4, (outer_nc,), jnp.float32)
    beta = 0.1 * jax.random.normal(k5, (outer_nc,), jnp.float32)

    fwd = jax.jit(unet_innermost_forward)
    out = jax.block_until_ready(fwd(x, w_down, w_up, gamma, beta))

    assert out.shape == (N, input_nc + outer_nc, D, H, W), out.shape
    assert out.dtype == jnp.float32

    ref = reference_forward(x, w_down, w_up, gamma, beta)
    # bf16 MXU operands and bf16 y writeback (f32 accumulation / f32 GroupNorm stats)
    # -> relaxed tolerance.
    if not jnp.allclose(out, ref, atol=5e-2, rtol=5e-2):
        max_err = float(jnp.max(jnp.abs(out - ref)))
        raise AssertionError(f"Pallas output mismatch vs reference, max_err={max_err}")

    print("KERNEL_OK")
</pallas_src>

<mosaic_0001>
module attributes {stable_mosaic.version = 11 : i64} {
  func.func @kernel(%arg0: i32, %arg1: memref<32x1024xbf16, #tpu.memory_space<vmem>>, %arg2: memref<128x864xbf16, #tpu.memory_space<vmem>>, %arg3: memref<1024x128xbf16, #tpu.memory_space<vmem>>, %arg4: memref<27x1x128xbf16, #tpu.memory_space<vmem>>, %arg5: memref<2x128xf32, #tpu.memory_space<vmem>>, %arg6: memref<128x2xf32, #tpu.memory_space<vmem>>, %arg7: memref<128x128xbf16, #tpu.memory_space<vmem>>, %arg8: memref<1x16x2xf32, #tpu.memory_space<vmem>>, %arg9: memref<1x16x2xf32, #tpu.memory_space<vmem>>) attributes {dimension_semantics = [#tpu.dimension_semantics<parallel>], iteration_bounds = array<i64: 1>, scalar_prefetch = 0 : i64, scratch_operands = 0 : i64, tpu.core_type = #tpu.core_type<tc>, window_params = [{pipeline_mode = #tpu.pipeline_mode<synchronous>, transform_indices = @transform_0, window_bounds = array<i64: 32, 1024>}, {pipeline_mode = #tpu.pipeline_mode<synchronous>, transform_indices = @transform_1, window_bounds = array<i64: 128, 864>}, {transform_indices = @transform_2, window_bounds = array<i64: 1024, 128>}, {transform_indices = @transform_3, window_bounds = array<i64: 27, 1, 128>}, {transform_indices = @transform_4, window_bounds = array<i64: 2, 128>}, {transform_indices = @transform_5, window_bounds = array<i64: 128, 2>}, {transform_indices = @transform_6, window_bounds = array<i64: 128, 128>}, {transform_indices = @transform_7, window_bounds = array<i64: 1, 16, 2>}, {transform_indices = @transform_8, window_bounds = array<i64: 1, 16, 2>}]} {
    %c0 = arith.constant 0 : index
    %c0_0 = arith.constant 0 : index
    %0 = vector.load %arg1[%c0, %c0_0] : memref<32x1024xbf16, #tpu.memory_space<vmem>>, vector<32x1024xbf16>
    %c0_1 = arith.constant 0 : index
    %c0_2 = arith.constant 0 : index
    %1 = vector.load %arg3[%c0_1, %c0_2] : memref<1024x128xbf16, #tpu.memory_space<vmem>>, vector<1024x128xbf16>
    %cst = arith.constant dense<0.000000e+00> : vector<32x128xf32>
    %2 = tpu.matmul %0, %1, %cst {dimension_numbers = #tpu.dot_dimension_numbers<[1], [0], [0], [1], [0, 0, 1, 1], [], []>} : vector<32x1024xbf16>, vector<1024x128xbf16>, vector<32x128xf32> -> vector<32x128xf32>
    %cst_3 = arith.constant 0.000000e+00 : f32
    %3 = vector.broadcast %cst_3 : f32 to vector<32x128xf32>
    %4 = arith.maximumf %2, %3 : vector<32x128xf32>
    %5 = arith.truncf %4 : vector<32x128xf32> to vector<32x128xbf16>
    %6 = vector.extract_strided_slice %5 {offsets = [0, 107], sizes = [32, 21], strides = [1, 1]} : vector<32x128xbf16> to vector<32x21xbf16>
    %7 = vector.extract_strided_slice %5 {offsets = [0, 0], sizes = [32, 107], strides = [1, 1]} : vector<32x128xbf16> to vector<32x107xbf16>
    %8 = tpu.concatenate %6, %7 in 1 : vector<32x21xbf16>, vector<32x107xbf16> -> vector<32x128xbf16>
    %c0_4 = arith.constant 0 : index
    %c0_5 = arith.constant 0 : index
    %c0_6 = arith.constant 0 : index
    %9 = vector.load %arg4[%c0_4, %c0_5, %c0_6] : memref<27x1x128xbf16, #tpu.memory_space<vmem>>, vector<1x1x128xbf16>
    %10 = vector.shape_cast %9 : vector<1x1x128xbf16> to vector<1x128xbf16>
    %11 = vector.broadcast %10 : vector<1x128xbf16> to vector<32x128xbf16>
    %12 = arith.mulf %8, %11 : vector<32x128xbf16>
    %13 = vector.extract_strided_slice %5 {offsets = [0, 108], sizes = [32, 20], strides = [1, 1]} : vector<32x128xbf16> to vector<32x20xbf16>
    %14 = vector.extract_strided_slice %5 {offsets = [0, 0], sizes = [32, 108], strides = [1, 1]} : vector<32x128xbf16> to vector<32x108xbf16>
    %15 = tpu.concatenate %13, %14 in 1 : vector<32x20xbf16>, vector<32x108xbf16> -> vector<32x128xbf16>
    %c1 = arith.constant 1 : index
    %c0_7 = arith.constant 0 : index
    %c0_8 = arith.constant 0 : index
    %16 = vector.load %arg4[%c1, %c0_7, %c0_8] : memref<27x1x128xbf16, #tpu.memory_space<vmem>>, vector<1x1x128xbf16>
    %17 = vector.shape_cast %16 : vector<1x1x128xbf16> to vector<1x128xbf16>
    %18 = vector.broadcast %17 : vector<1x128xbf16> to vector<32x128xbf16>
    %19 = arith.mulf %15, %18 : vector<32x128xbf16>
    %20 = vector.extract_strided_slice %5 {offsets = [0, 109], sizes = [32, 19], strides = [1, 1]} : vector<32x128xbf16> to vector<32x19xbf16>
    %21 = vector.extract_strided_slice %5 {offsets = [0, 0], sizes = [32, 109], strides = [1, 1]} : vector<32x128xbf16> to vector<32x109xbf16>
    %22 = tpu.concatenate %20, %21 in 1 : vector<32x19xbf16>, vector<32x109xbf16> -> vector<32x128xbf16>
    %c2 = arith.constant 2 : index
    %c0_9 = arith.constant 0 : index
    %c0_10 = arith.constant 0 : index
    %23 = vector.load %arg4[%c2, %c0_9, %c0_10] : memref<27x1x128xbf16, #tpu.memory_space<vmem>>, vector<1x1x128xbf16>
    %24 = vector.shape_cast %23 : vector<1x1x128xbf16> to vector<1x128xbf16>
    %25 = vector.broadcast %24 : vector<1x128xbf16> to vector<32x128xbf16>
    %26 = arith.mulf %22, %25 : vector<32x128xbf16>
    %27 = vector.extract_strided_slice %5 {offsets = [0, 111], sizes = [32, 17], strides = [1, 1]} : vector<32x128xbf16> to vector<32x17xbf16>
    %28 = vector.extract_strided_slice %5 {offsets = [0, 0], sizes = [32, 111], strides = [1, 1]} : vector<32x128xbf16> to vector<32x111xbf16>
    %29 = tpu.concatenate %27, %28 in 1 : vector<32x17xbf16>, vector<32x111xbf16> -> vector<32x128xbf16>
    %c3 = arith.constant 3 : index
    %c0_11 = arith.constant 0 : index
    %c0_12 = arith.constant 0 : index
    %30 = vector.load %arg4[%c3, %c0_11, %c0_12] : memref<27x1x128xbf16, #tpu.memory_space<vmem>>, vector<1x1x128xbf16>
    %31 = vector.shape_cast %30 : vector<1x1x128xbf16> to vector<1x128xbf16>
    %32 = vector.broadcast %31 : vector<1x128xbf16> to vector<32x128xbf16>
    %33 = arith.mulf %29, %32 : vector<32x128xbf16>
    %34 = vector.extract_strided_slice %5 {offsets = [0, 112], sizes = [32, 16], strides = [1, 1]} : vector<32x128xbf16> to vector<32x16xbf16>
    %35 = vector.extract_strided_slice %5 {offsets = [0, 0], sizes = [32, 112], strides = [1, 1]} : vector<32x128xbf16> to vector<32x112xbf16>
    %36 = tpu.concatenate %34, %35 in 1 : vector<32x16xbf16>, vector<32x112xbf16> -> vector<32x128xbf16>
    %c4 = arith.constant 4 : index
    %c0_13 = arith.constant 0 : index
    %c0_14 = arith.constant 0 : index
    %37 = vector.load %arg4[%c4, %c0_13, %c0_14] : memref<27x1x128xbf16, #tpu.memory_space<vmem>>, vector<1x1x128xbf16>
    %38 = vector.shape_cast %37 : vector<1x1x128xbf16> to vector<1x128xbf16>
    %39 = vector.broadcast %38 : vector<1x128xbf16> to vector<32x128xbf16>
    %40 = arith.mulf %36, %39 : vector<32x128xbf16>
    %41 = vector.extract_strided_slice %5 {offsets = [0, 113], sizes = [32, 15], strides = [1, 1]} : vector<32x128xbf16> to vector<32x15xbf16>
    %42 = vector.extract_strided_slice %5 {offsets = [0, 0], sizes = [32, 113], strides = [1, 1]} : vector<32x128xbf16> to vector<32x113xbf16>
    %43 = tpu.concatenate %41, %42 in 1 : vector<32x15xbf16>, vector<32x113xbf16> -> vector<32x128xbf16>
    %c5 = arith.constant 5 : index
    %c0_15 = arith.constant 0 : index
    %c0_16 = arith.constant 0 : index
    %44 = vector.load %arg4[%c5, %c0_15, %c0_16] : memref<27x1x128xbf16, #tpu.memory_space<vmem>>, vector<1x1x128xbf16>
    %45 = vector.shape_cast %44 : vector<1x1x128xbf16> to vector<1x128xbf16>
    %46 = vector.broadcast %45 : vector<1x128xbf16> to vector<32x128xbf16>
    %47 = arith.mulf %43, %46 : vector<32x128xbf16>
    %48 = vector.extract_strided_slice %5 {offsets = [0, 115], sizes = [32, 13], strides = [1, 1]} : vector<32x128xbf16> to vector<32x13xbf16>
    %49 = vector.extract_strided_slice %5 {offsets = [0, 0], sizes = [32, 115], strides = [1, 1]} : vector<32x128xbf16> to vector<32x115xbf16>
    %50 = tpu.concatenate %48, %49 in 1 : vector<32x13xbf16>, vector<32x115xbf16> -> vector<32x128xbf16>
    %c6 = arith.constant 6 : index
    %c0_17 = arith.constant 0 : index
    %c0_18 = arith.constant 0 : index
    %51 = vector.load %arg4[%c6, %c0_17, %c0_18] : memref<27x1x128xbf16, #tpu.memory_space<vmem>>, vector<1x1x128xbf16>
    %52 = vector.shape_cast %51 : vector<1x1x128xbf16> to vector<1x128xbf16>
    %53 = vector.broadcast %52 : vector<1x128xbf16> to vector<32x128xbf16>
    %54 = arith.mulf %50, %53 : vector<32x128xbf16>
    %55 = vector.extract_strided_slice %5 {offsets = [0, 116], sizes = [32, 12], strides = [1, 1]} : vector<32x128xbf16> to vector<32x12xbf16>
    %56 = vector.extract_strided_slice %5 {offsets = [0, 0], sizes = [32, 116], strides = [1, 1]} : vector<32x128xbf16> to vector<32x116xbf16>
    %57 = tpu.concatenate %55, %56 in 1 : vector<32x12xbf16>, vector<32x116xbf16> -> vector<32x128xbf16>
    %c7 = arith.constant 7 : index
    %c0_19 = arith.constant 0 : index
    %c0_20 = arith.constant 0 : index
    %58 = vector.load %arg4[%c7, %c0_19, %c0_20] : memref<27x1x128xbf16, #tpu.memory_space<vmem>>, vector<1x1x128xbf16>
    %59 = vector.shape_cast %58 : vector<1x1x128xbf16> to vector<1x128xbf16>
    %60 = vector.broadcast %59 : vector<1x128xbf16> to vector<32x128xbf16>
    %61 = arith.mulf %57, %60 : vector<32x128xbf16>
    %62 = vector.extract_strided_slice %5 {offsets = [0, 117], sizes = [32, 11], strides = [1, 1]} : vector<32x128xbf16> to vector<32x11xbf16>
    %63 = vector.extract_strided_slice %5 {offsets = [0, 0], sizes = [32, 117], strides = [1, 1]} : vector<32x128xbf16> to vector<32x117xbf16>
    %64 = tpu.concatenate %62, %63 in 1 : vector<32x11xbf16>, vector<32x117xbf16> -> vector<32x128xbf16>
    %c8 = arith.constant 8 : index
    %c0_21 = arith.constant 0 : index
    %c0_22 = arith.constant 0 : index
    %65 = vector.load %arg4[%c8, %c0_21, %c0_22] : memref<27x1x128xbf16, #tpu.memory_space<vmem>>, vector<1x1x128xbf16>
    %66 = vector.shape_cast %65 : vector<1x1x128xbf16> to vector<1x128xbf16>
    %67 = vector.broadcast %66 : vector<1x128xbf16> to vector<32x128xbf16>
    %68 = arith.mulf %64, %67 : vector<32x128xbf16>
    %69 = vector.extract_strided_slice %5 {offsets = [0, 123], sizes = [32, 5], strides = [1, 1]} : vector<32x128xbf16> to vector<32x5xbf16>
    %70 = vector.extract_strided_slice %5 {offsets = [0, 0], sizes = [32, 123], strides = [1, 1]} : vector<32x128xbf16> to vector<32x123xbf16>
    %71 = tpu.concatenate %69, %70 in 1 : vector<32x5xbf16>, vector<32x123xbf16> -> vector<32x128xbf16>
    %c9 = arith.constant 9 : index
    %c0_23 = arith.constant 0 : index
    %c0_24 = arith.constant 0 : index
    %72 = vector.load %arg4[%c9, %c0_23, %c0_24] : memref<27x1x128xbf16, #tpu.memory_space<vmem>>, vector<1x1x128xbf16>
    %73 = vector.shape_cast %72 : vector<1x1x128xbf16> to vector<1x128xbf16>
    %74 = vector.broadcast %73 : vector<1x128xbf16> to vector<32x128xbf16>
    %75 = arith.mulf %71, %74 : vector<32x128xbf16>
    %76 = vector.extract_strided_slice %5 {offsets = [0, 124], sizes = [32, 4], strides = [1, 1]} : vector<32x128xbf16> to vector<32x4xbf16>
    %77 = vector.extract_strided_slice %5 {offsets = [0, 0], sizes = [32, 124], strides = [1, 1]} : vector<32x128xbf16> to vector<32x124xbf16>
    %78 = tpu.concatenate %76, %77 in 1 : vector<32x4xbf16>, vector<32x124xbf16> -> vector<32x128xbf16>
    %c10 = arith.constant 10 : index
    %c0_25 = arith.constant 0 : index
    %c0_26 = arith.constant 0 : index
    %79 = vector.load %arg4[%c10, %c0_25, %c0_26] : memref<27x1x128xbf16, #tpu.memory_space<vmem>>, vector<1x1x128xbf16>
    %80 = vector.shape_cast %79 : vector<1x1x128xbf16> to vector<1x128xbf16>
    %81 = vector.broadcast %80 : vector<1x128xbf16> to vector<32x128xbf16>
    %82 = arith.mulf %78, %81 : vector<32x128xbf16>
    %83 = vector.extract_strided_slice %5 {offsets = [0, 125], sizes = [32, 3], strides = [1, 1]} : vector<32x128xbf16> to vector<32x3xbf16>
    %84 = vector.extract_strided_slice %5 {offsets = [0, 0], sizes = [32, 125], strides = [1, 1]} : vector<32x128xbf16> to vector<32x125xbf16>
    %85 = tpu.concatenate %83, %84 in 1 : vector<32x3xbf16>, vector<32x125xbf16> -> vector<32x128xbf16>
    %c11 = arith.constant 11 : index
    %c0_27 = arith.constant 0 : index
    %c0_28 = arith.constant 0 : index
    %86 = vector.load %arg4[%c11, %c0_27, %c0_28] : memref<27x1x128xbf16, #tpu.memory_space<vmem>>, vector<1x1x128xbf16>
    %87 = vector.shape_cast %86 : vector<1x1x128xbf16> to vector<1x128xbf16>
    %88 = vector.broadcast %87 : vector<1x128xbf16> to vector<32x128xbf16>
    %89 = arith.mulf %85, %88 : vector<32x128xbf16>
    %90 = vector.extract_strided_slice %5 {offsets = [0, 127], sizes = [32, 1], strides = [1, 1]} : vector<32x128xbf16> to vector<32x1xbf16>
    %91 = vector.extract_strided_slice %5 {offsets = [0, 0], sizes = [32, 127], strides = [1, 1]} : vector<32x128xbf16> to vector<32x127xbf16>
    %92 = tpu.concatenate %90, %91 in 1 : vector<32x1xbf16>, vector<32x127xbf16> -> vector<32x128xbf16>
    %c12 = arith.constant 12 : index
    %c0_29 = arith.constant 0 : index
    %c0_30 = arith.constant 0 : index
    %93 = vector.load %arg4[%c12, %c0_29, %c0_30] : memref<27x1x128xbf16, #tpu.memory_space<vmem>>, vector<1x1x128xbf16>
    %94 = vector.shape_cast %93 : vector<1x1x128xbf16> to vector<1x128xbf16>
    %95 = vector.broadcast %94 : vector<1x128xbf16> to vector<32x128xbf16>
    %96 = arith.mulf %92, %95 : vector<32x128xbf16>
    %c13 = arith.constant 13 : index
    %c0_31 = arith.constant 0 : index
    %c0_32 = arith.constant 0 : index
    %97 = vector.load %arg4[%c13, %c0_31, %c0_32] : memref<27x1x128xbf16, #tpu.memory_space<vmem>>, vector<1x1x128xbf16>
    %98 = vector.shape_cast %97 : vector<1x1x128xbf16> to vector<1x128xbf16>
    %99 = vector.broadcast %98 : vector<1x128xbf16> to vector<32x128xbf16>
    %100 = arith.mulf %5, %99 : vector<32x128xbf16>
    %101 = vector.extract_strided_slice %5 {offsets = [0, 1], sizes = [32, 127], strides = [1, 1]} : vector<32x128xbf16> to vector<32x127xbf16>
    %102 = vector.extract_strided_slice %5 {offsets = [0, 0], sizes = [32, 1], strides = [1, 1]} : vector<32x128xbf16> to vector<32x1xbf16>
    %103 = tpu.concatenate %101, %102 in 1 : vector<32x127xbf16>, vector<32x1xbf16> -> vector<32x128xbf16>
    %c14 = arith.constant 14 : index
    %c0_33 = arith.constant 0 : index
    %c0_34 = arith.constant 0 : index
    %104 = vector.load %arg4[%c14, %c0_33, %c0_34] : memref<27x1x128xbf16, #tpu.memory_space<vmem>>, vector<1x1x128xbf16>
    %105 = vector.shape_cast %104 : vector<1x1x128xbf16> to vector<1x128xbf16>
    %106 = vector.broadcast %105 : vector<1x128xbf16> to vector<32x128xbf16>
    %107 = arith.mulf %103, %106 : vector<32x128xbf16>
    %108 = vector.extract_strided_slice %5 {offsets = [0, 3], sizes = [32, 125], strides = [1, 1]} : vector<32x128xbf16> to vector<32x125xbf16>
    %109 = vector.extract_strided_slice %5 {offsets = [0, 0], sizes = [32, 3], strides = [1, 1]} : vector<32x128xbf16> to vector<32x3xbf16>
    %110 = tpu.concatenate %108, %109 in 1 : vector<32x125xbf16>, vector<32x3xbf16> -> vector<32x128xbf16>
    %c15 = arith.constant 15 : index
    %c0_35 = arith.constant 0 : index
    %c0_36 = arith.constant 0 : index
    %111 = vector.load %arg4[%c15, %c0_35, %c0_36] : memref<27x1x128xbf16, #tpu.memory_space<vmem>>, vector<1x1x128xbf16>
    %112 = vector.shape_cast %111 : vector<1x1x128xbf16> to vector<1x128xbf16>
    %113 = vector.broadcast %112 : vector<1x128xbf16> to vector<32x128xbf16>
    %114 = arith.mulf %110, %113 : vector<32x128xbf16>
    %115 = vector.extract_strided_slice %5 {offsets = [0, 4], sizes = [32, 124], strides = [1, 1]} : vector<32x128xbf16> to vector<32x124xbf16>
    %116 = vector.extract_strided_slice %5 {offsets = [0, 0], sizes = [32, 4], strides = [1, 1]} : vector<32x128xbf16> to vector<32x4xbf16>
    %117 = tpu.concatenate %115, %116 in 1 : vector<32x124xbf16>, vector<32x4xbf16> -> vector<32x128xbf16>
    %c16 = arith.constant 16 : index
    %c0_37 = arith.constant 0 : index
    %c0_38 = arith.constant 0 : index
    %118 = vector.load %arg4[%c16, %c0_37, %c0_38] : memref<27x1x128xbf16, #tpu.memory_space<vmem>>, vector<1x1x128xbf16>
    %119 = vector.shape_cast %118 : vector<1x1x128xbf16> to vector<1x128xbf16>
    %120 = vector.broadcast %119 : vector<1x128xbf16> to vector<32x128xbf16>
    %121 = arith.mulf %117, %120 : vector<32x128xbf16>
    %122 = vector.extract_strided_slice %5 {offsets = [0, 5], sizes = [32, 123], strides = [1, 1]} : vector<32x128xbf16> to vector<32x123xbf16>
    %123 = vector.extract_strided_slice %5 {offsets = [0, 0], sizes = [32, 5], strides = [1, 1]} : vector<32x128xbf16> to vector<32x5xbf16>
    %124 = tpu.concatenate %122, %123 in 1 : vector<32x123xbf16>, vector<32x5xbf16> -> vector<32x128xbf16>
    %c17 = arith.constant 17 : index
    %c0_39 = arith.constant 0 : index
    %c0_40 = arith.constant 0 : index
    %125 = vector.load %arg4[%c17, %c0_39, %c0_40] : memref<27x1x128xbf16, #tpu.memory_space<vmem>>, vector<1x1x128xbf16>
    %126 = vector.shape_cast %125 : vector<1x1x128xbf16> to vector<1x128xbf16>
    %127 = vector.broadcast %126 : vector<1x128xbf16> to vector<32x128xbf16>
    %128 = arith.mulf %124, %127 : vector<32x128xbf16>
    %129 = vector.extract_strided_slice %5 {offsets = [0, 11], sizes = [32, 117], strides = [1, 1]} : vector<32x128xbf16> to vector<32x117xbf16>
    %130 = vector.extract_strided_slice %5 {offsets = [0, 0], sizes = [32, 11], strides = [1, 1]} : vector<32x128xbf16> to vector<32x11xbf16>
    %131 = tpu.concatenate %129, %130 in 1 : vector<32x117xbf16>, vector<32x11xbf16> -> vector<32x128xbf16>
    %c18 = arith.constant 18 : index
    %c0_41 = arith.constant 0 : index
    %c0_42 = arith.constant 0 : index
    %132 = vector.load %arg4[%c18, %c0_41, %c0_42] : memref<27x1x128xbf16, #tpu.memory_space<vmem>>, vector<1x1x128xbf16>
    %133 = vector.shape_cast %132 : vector<1x1x128xbf16> to vector<1x128xbf16>
    %134 = vector.broadcast %133 : vector<1x128xbf16> to vector<32x128xbf16>
    %135 = arith.mulf %131, %134 : vector<32x128xbf16>
    %136 = vector.extract_strided_slice %5 {offsets = [0, 12], sizes = [32, 116], strides = [1, 1]} : vector<32x128xbf16> to vector<32x116xbf16>
    %137 = vector.extract_strided_slice %5 {offsets = [0, 0], sizes = [32, 12], strides = [1, 1]} : vector<32x128xbf16> to vector<32x12xbf16>
    %138 = tpu.concatenate %136, %137 in 1 : vector<32x116xbf16>, vector<32x12xbf16> -> vector<32x128xbf16>
    %c19 = arith.constant 19 : index
    %c0_43 = arith.constant 0 : index
    %c0_44 = arith.constant 0 : index
    %139 = vector.load %arg4[%c19, %c0_43, %c0_44] : memref<27x1x128xbf16, #tpu.memory_space<vmem>>, vector<1x1x128xbf16>
    %140 = vector.shape_cast %139 : vector<1x1x128xbf16> to vector<1x128xbf16>
    %141 = vector.broadcast %140 : vector<1x128xbf16> to vector<32x128xbf16>
    %142 = arith.mulf %138, %141 : vector<32x128xbf16>
    %143 = vector.extract_strided_slice %5 {offsets = [0, 13], sizes = [32, 115], strides = [1, 1]} : vector<32x128xbf16> to vector<32x115xbf16>
    %144 = vector.extract_strided_slice %5 {offsets = [0, 0], sizes = [32, 13], strides = [1, 1]} : vector<32x128xbf16> to vector<32x13xbf16>
    %145 = tpu.concatenate %143, %144 in 1 : vector<32x115xbf16>, vector<32x13xbf16> -> vector<32x128xbf16>
    %c20 = arith.constant 20 : index
    %c0_45 = arith.constant 0 : index
    %c0_46 = arith.constant 0 : index
    %146 = vector.load %arg4[%c20, %c0_45, %c0_46] : memref<27x1x128xbf16, #tpu.memory_space<vmem>>, vector<1x1x128xbf16>
    %147 = vector.shape_cast %146 : vector<1x1x128xbf16> to vector<1x128xbf16>
    %148 = vector.broadcast %147 : vector<1x128xbf16> to vector<32x128xbf16>
    %149 = arith.mulf %145, %148 : vector<32x128xbf16>
    %150 = vector.extract_strided_slice %5 {offsets = [0, 15], sizes = [32, 113], strides = [1, 1]} : vector<32x128xbf16> to vector<32x113xbf16>
    %151 = vector.extract_strided_slice %5 {offsets = [0, 0], sizes = [32, 15], strides = [1, 1]} : vector<32x128xbf16> to vector<32x15xbf16>
    %152 = tpu.concatenate %150, %151 in 1 : vector<32x113xbf16>, vector<32x15xbf16> -> vector<32x128xbf16>
    %c21 = arith.constant 21 : index
    %c0_47 = arith.constant 0 : index
    %c0_48 = arith.constant 0 : index
    %153 = vector.load %arg4[%c21, %c0_47, %c0_48] : memref<27x1x128xbf16, #tpu.memory_space<vmem>>, vector<1x1x128xbf16>
    %154 = vector.shape_cast %153 : vector<1x1x128xbf16> to vector<1x128xbf16>
    %155 = vector.broadcast %154 : vector<1x128xbf16> to vector<32x128xbf16>
    %156 = arith.mulf %152, %155 : vector<32x128xbf16>
    %157 = vector.extract_strided_slice %5 {offsets = [0, 16], sizes = [32, 112], strides = [1, 1]} : vector<32x128xbf16> to vector<32x112xbf16>
    %158 = vector.extract_strided_slice %5 {offsets = [0, 0], sizes = [32, 16], strides = [1, 1]} : vector<32x128xbf16> to vector<32x16xbf16>
    %159 = tpu.concatenate %157, %158 in 1 : vector<32x112xbf16>, vector<32x16xbf16> -> vector<32x128xbf16>
    %c22 = arith.constant 22 : index
    %c0_49 = arith.constant 0 : index
    %c0_50 = arith.constant 0 : index
    %160 = vector.load %arg4[%c22, %c0_49, %c0_50] : memref<27x1x128xbf16, #tpu.memory_space<vmem>>, vector<1x1x128xbf16>
    %161 = vector.shape_cast %160 : vector<1x1x128xbf16> to vector<1x128xbf16>
    %162 = vector.broadcast %161 : vector<1x128xbf16> to vector<32x128xbf16>
    %163 = arith.mulf %159, %162 : vector<32x128xbf16>
    %164 = vector.extract_strided_slice %5 {offsets = [0, 17], sizes = [32, 111], strides = [1, 1]} : vector<32x128xbf16> to vector<32x111xbf16>
    %165 = vector.extract_strided_slice %5 {offsets = [0, 0], sizes = [32, 17], strides = [1, 1]} : vector<32x128xbf16> to vector<32x17xbf16>
    %166 = tpu.concatenate %164, %165 in 1 : vector<32x111xbf16>, vector<32x17xbf16> -> vector<32x128xbf16>
    %c23 = arith.constant 23 : index
    %c0_51 = arith.constant 0 : index
    %c0_52 = arith.constant 0 : index
    %167 = vector.load %arg4[%c23, %c0_51, %c0_52] : memref<27x1x128xbf16, #tpu.memory_space<vmem>>, vector<1x1x128xbf16>
    %168 = vector.shape_cast %167 : vector<1x1x128xbf16> to vector<1x128xbf16>
    %169 = vector.broadcast %168 : vector<1x128xbf16> to vector<32x128xbf16>
    %170 = arith.mulf %166, %169 : vector<32x128xbf16>
    %171 = vector.extract_strided_slice %5 {offsets = [0, 19], sizes = [32, 109], strides = [1, 1]} : vector<32x128xbf16> to vector<32x109xbf16>
    %172 = vector.extract_strided_slice %5 {offsets = [0, 0], sizes = [32, 19], strides = [1, 1]} : vector<32x128xbf16> to vector<32x19xbf16>
    %173 = tpu.concatenate %171, %172 in 1 : vector<32x109xbf16>, vector<32x19xbf16> -> vector<32x128xbf16>
    %c24 = arith.constant 24 : index
    %c0_53 = arith.constant 0 : index
    %c0_54 = arith.constant 0 : index
    %174 = vector.load %arg4[%c24, %c0_53, %c0_54] : memref<27x1x128xbf16, #tpu.memory_space<vmem>>, vector<1x1x128xbf16>
    %175 = vector.shape_cast %174 : vector<1x1x128xbf16> to vector<1x128xbf16>
    %176 = vector.broadcast %175 : vector<1x128xbf16> to vector<32x128xbf16>
    %177 = arith.mulf %173, %176 : vector<32x128xbf16>
    %178 = vector.extract_strided_slice %5 {offsets = [0, 20], sizes = [32, 108], strides = [1, 1]} : vector<32x128xbf16> to vector<32x108xbf16>
    %179 = vector.extract_strided_slice %5 {offsets = [0, 0], sizes = [32, 20], strides = [1, 1]} : vector<32x128xbf16> to vector<32x20xbf16>
    %180 = tpu.concatenate %178, %179 in 1 : vector<32x108xbf16>, vector<32x20xbf16> -> vector<32x128xbf16>
    %c25 = arith.constant 25 : index
    %c0_55 = arith.constant 0 : index
    %c0_56 = arith.constant 0 : index
    %181 = vector.load %arg4[%c25, %c0_55, %c0_56] : memref<27x1x128xbf16, #tpu.memory_space<vmem>>, vector<1x1x128xbf16>
    %182 = vector.shape_cast %181 : vector<1x1x128xbf16> to vector<1x128xbf16>
    %183 = vector.broadcast %182 : vector<1x128xbf16> to vector<32x128xbf16>
    %184 = arith.mulf %180, %183 : vector<32x128xbf16>
    %185 = vector.extract_strided_slice %5 {offsets = [0, 21], sizes = [32, 107], strides = [1, 1]} : vector<32x128xbf16> to vector<32x107xbf16>
    %186 = vector.extract_strided_slice %5 {offsets = [0, 0], sizes = [32, 21], strides = [1, 1]} : vector<32x128xbf16> to vector<32x21xbf16>
    %187 = tpu.concatenate %185, %186 in 1 : vector<32x107xbf16>, vector<32x21xbf16> -> vector<32x128xbf16>
    %c26 = arith.constant 26 : index
    %c0_57 = arith.constant 0 : index
    %c0_58 = arith.constant 0 : index
    %188 = vector.load %arg4[%c26, %c0_57, %c0_58] : memref<27x1x128xbf16, #tpu.memory_space<vmem>>, vector<1x1x128xbf16>
    %189 = vector.shape_cast %188 : vector<1x1x128xbf16> to vector<1x128xbf16>
    %190 = vector.broadcast %189 : vector<1x128xbf16> to vector<32x128xbf16>
    %191 = arith.mulf %187, %190 : vector<32x128xbf16>
    %192 = tpu.concatenate %12, %19, %26, %33, %40, %47, %54, %61, %68, %75, %82, %89, %96, %100, %107, %114 in 0 : vector<32x128xbf16>, vector<32x128xbf16>, vector<32x128xbf16>, vector<32x128xbf16>, vector<32x128xbf16>, vector<32x128xbf16>, vector<32x128xbf16>, vector<32x128xbf16>, vector<32x128xbf16>, vector<32x128xbf16>, vector<32x128xbf16>, vector<32x128xbf16>, vector<32x128xbf16>, vector<32x128xbf16>, vector<32x128xbf16>, vector<32x128xbf16> -> vector<512x128xbf16>
    %193 = tpu.concatenate %121, %128, %135, %142, %149, %156, %163, %170, %177, %184, %191 in 0 : vector<32x128xbf16>, vector<32x128xbf16>, vector<32x128xbf16>, vector<32x128xbf16>, vector<32x128xbf16>, vector<32x128xbf16>, vector<32x128xbf16>, vector<32x128xbf16>, vector<32x128xbf16>, vector<32x128xbf16>, vector<32x128xbf16> -> vector<352x128xbf16>
    %194 = tpu.concatenate %192, %193 in 0 : vector<512x128xbf16>, vector<352x128xbf16> -> vector<864x128xbf16>
    %c0_59 = arith.constant 0 : index
    %c0_60 = arith.constant 0 : index
    %195 = vector.load %arg2[%c0_59, %c0_60] : memref<128x864xbf16, #tpu.memory_space<vmem>>, vector<128x864xbf16>
    %cst_61 = arith.constant dense<0.000000e+00> : vector<128x128xf32>
    %196 = tpu.matmul %195, %194, %cst_61 {dimension_numbers = #tpu.dot_dimension_numbers<[1], [0], [0], [1], [0, 0, 1, 1], [], []>} : vector<128x864xbf16>, vector<864x128xbf16>, vector<128x128xf32> -> vector<128x128xf32>
    %197 = arith.truncf %196 : vector<128x128xf32> to vector<128x128xbf16>
    %c0_62 = arith.constant 0 : index
    %c0_63 = arith.constant 0 : index
    %198 = vector.load %arg7[%c0_62, %c0_63] : memref<128x128xbf16, #tpu.memory_space<vmem>>, vector<128x128xbf16>
    tpu.vector_store %arg7[%c0_62, %c0_63], %197 {strides = array<i32>} : memref<128x128xbf16, #tpu.memory_space<vmem>>, vector<128x128xbf16>,
    %199 = vector.extract_strided_slice %196 {offsets = [0, 0], sizes = [16, 128], strides = [1, 1]} : vector<128x128xf32> to vector<16x128xf32>
    %200 = vector.extract_strided_slice %196 {offsets = [16, 0], sizes = [16, 128], strides = [1, 1]} : vector<128x128xf32> to vector<16x128xf32>
    %201 = arith.addf %199, %200 : vector<16x128xf32>
    %202 = vector.extract_strided_slice %196 {offsets = [32, 0], sizes = [16, 128], strides = [1, 1]} : vector<128x128xf32> to vector<16x128xf32>
    %203 = arith.addf %201, %202 : vector<16x128xf32>
    %204 = vector.extract_strided_slice %196 {offsets = [48, 0], sizes = [16, 128], strides = [1, 1]} : vector<128x128xf32> to vector<16x128xf32>
    %205 = arith.addf %203, %204 : vector<16x128xf32>
    %206 = vector.extract_strided_slice %196 {offsets = [64, 0], sizes = [16, 128], strides = [1, 1]} : vector<128x128xf32> to vector<16x128xf32>
    %207 = arith.addf %205, %206 : vector<16x128xf32>
    %208 = vector.extract_strided_slice %196 {offsets = [80, 0], sizes = [16, 128], strides = [1, 1]} : vector<128x128xf32> to vector<16x128xf32>
    %209 = arith.addf %207, %208 : vector<16x128xf32>
    %210 = vector.extract_strided_slice %196 {offsets = [96, 0], sizes = [16, 128], strides = [1, 1]} : vector<128x128xf32> to vector<16x128xf32>
    %211 = arith.addf %209, %210 : vector<16x128xf32>
    %212 = vector.extract_strided_slice %196 {offsets = [112, 0], sizes = [16, 128], strides = [1, 1]} : vector<128x128xf32> to vector<16x128xf32>
    %213 = arith.addf %211, %212 : vector<16x128xf32>
    %c0_64 = arith.constant 0 : index
    %c0_65 = arith.constant 0 : index
    %214 = vector.load %arg6[%c0_64, %c0_65] : memref<128x2xf32, #tpu.memory_space<vmem>>, vector<128x2xf32>
    %c0_66 = arith.constant 0 : index
    %c0_67 = arith.constant 0 : index
    %215 = vector.load %arg5[%c0_66, %c0_67] : memref<2x128xf32, #tpu.memory_space<vmem>>, vector<2x128xf32>
    %cst_68 = arith.constant dense<0.000000e+00> : vector<16x2xf32>
    %216 = tpu.matmul %213, %214, %cst_68 {dimension_numbers = #tpu.dot_dimension_numbers<[1], [0], [0], [1], [0, 0, 1, 1], [], []>} : vector<16x128xf32>, vector<128x2xf32>, vector<16x2xf32> -> vector<16x2xf32>
    %cst_69 = arith.constant 0.001953125 : f32
    %217 = vector.broadcast %cst_69 : f32 to vector<16x2xf32>
    %218 = arith.mulf %216, %217 : vector<16x2xf32>
    %cst_70 = arith.constant dense<0.000000e+00> : vector<16x128xf32>
    %219 = tpu.matmul %218, %215, %cst_70 {dimension_numbers = #tpu.dot_dimension_numbers<[1], [0], [0], [1], [0, 0, 1, 1], [], []>} : vector<16x2xf32>, vector<2x128xf32>, vector<16x128xf32> -> vector<16x128xf32>
    %220 = vector.extract_strided_slice %196 {offsets = [0, 0], sizes = [16, 128], strides = [1, 1]} : vector<128x128xf32> to vector<16x128xf32>
    %221 = arith.subf %220, %219 : vector<16x128xf32>
    %222 = arith.mulf %221, %221 : vector<16x128xf32>
    %223 = vector.extract_strided_slice %196 {offsets = [16, 0], sizes = [16, 128], strides = [1, 1]} : vector<128x128xf32> to vector<16x128xf32>
    %224 = arith.subf %223, %219 : vector<16x128xf32>
    %225 = arith.mulf %224, %224 : vector<16x128xf32>
    %226 = arith.addf %222, %225 : vector<16x128xf32>
    %227 = vector.extract_strided_slice %196 {offsets = [32, 0], sizes = [16, 128], strides = [1, 1]} : vector<128x128xf32> to vector<16x128xf32>
    %228 = arith.subf %227, %219 : vector<16x128xf32>
    %229 = arith.mulf %228, %228 : vector<16x128xf32>
    %230 = arith.addf %226, %229 : vector<16x128xf32>
    %231 = vector.extract_strided_slice %196 {offsets = [48, 0], sizes = [16, 128], strides = [1, 1]} : vector<128x128xf32> to vector<16x128xf32>
    %232 = arith.subf %231, %219 : vector<16x128xf32>
    %233 = arith.mulf %232, %232 : vector<16x128xf32>
    %234 = arith.addf %230, %233 : vector<16x128xf32>
    %235 = vector.extract_strided_slice %196 {offsets = [64, 0], sizes = [16, 128], strides = [1, 1]} : vector<128x128xf32> to vector<16x128xf32>
    %236 = arith.subf %235, %219 : vector<16x128xf32>
    %237 = arith.mulf %236, %236 : vector<16x128xf32>
    %238 = arith.addf %234, %237 : vector<16x128xf32>
    %239 = vector.extract_strided_slice %196 {offsets = [80, 0], sizes = [16, 128], strides = [1, 1]} : vector<128x128xf32> to vector<16x128xf32>
    %240 = arith.subf %239, %219 : vector<16x128xf32>
    %241 = arith.mulf %240, %240 : vector<16x128xf32>
    %242 = arith.addf %238, %241 : vector<16x128xf32>
    %243 = vector.extract_strided_slice %196 {offsets = [96, 0], sizes = [16, 128], strides = [1, 1]} : vector<128x128xf32> to vector<16x128xf32>
    %244 = arith.subf %243, %219 : vector<16x128xf32>
    %245 = arith.mulf %244, %244 : vector<16x128xf32>
    %246 = arith.addf %242, %245 : vector<16x128xf32>
    %247 = vector.extract_strided_slice %196 {offsets = [112, 0], sizes = [16, 128], strides = [1, 1]} : vector<128x128xf32> to vector<16x128xf32>
    %248 = arith.subf %247, %219 : vector<16x128xf32>
    %249 = arith.mulf %248, %248 : vector<16x128xf32>
    %250 = arith.addf %246, %249 : vector<16x128xf32>
    %cst_71 = arith.constant dense<0.000000e+00> : vector<16x2xf32>
    %251 = tpu.matmul %250, %214, %cst_71 {dimension_numbers = #tpu.dot_dimension_numbers<[1], [0], [0], [1], [0, 0, 1, 1], [], []>} : vector<16x128xf32>, vector<128x2xf32>, vector<16x2xf32> -> vector<16x2xf32>
    %c0_72 = arith.constant 0 : index
    %c0_73 = arith.constant 0 : index
    %c0_74 = arith.constant 0 : index
    %252 = vector.load %arg8[%c0_72, %c0_73, %c0_74] : memref<1x16x2xf32, #tpu.memory_space<vmem>>, vector<1x16x2xf32>
    %253 = vector.shape_cast %252 : vector<1x16x2xf32> to vector<16x2xf32>
    %254 = vector.shape_cast %216 : vector<16x2xf32> to vector<1x16x2xf32>
    tpu.vector_store %arg8[%c0_72, %c0_73, %c0_74], %254 {strides = array<i32>} : memref<1x16x2xf32, #tpu.memory_space<vmem>>, vector<1x16x2xf32>,
    %c0_75 = arith.constant 0 : index
    %c0_76 = arith.constant 0 : index
    %c0_77 = arith.constant 0 : index
    %255 = vector.load %arg9[%c0_75, %c0_76, %c0_77] : memref<1x16x2xf32, #tpu.memory_space<vmem>>, vector<1x16x2xf32>
    %256 = vector.shape_cast %255 : vector<1x16x2xf32> to vector<16x2xf32>
    %257 = vector.shape_cast %251 : vector<16x2xf32> to vector<1x16x2xf32>
    tpu.vector_store %arg9[%c0_75, %c0_76, %c0_77], %257 {strides = array<i32>} : memref<1x16x2xf32, #tpu.memory_space<vmem>>, vector<1x16x2xf32>,
    return
  }
  func.func @transform_0(%arg0: i32) -> (i32, i32) {
    %c0_i32 = arith.constant 0 : i32
    %c0_i32_0 = arith.constant 0 : i32
    %c0_i32_1 = arith.constant 0 : i32
    return %c0_i32, %c0_i32_0 : i32, i32
  }
  func.func @transform_1(%arg0: i32) -> (i32, i32) {
    %c0_i32 = arith.constant 0 : i32
    %c0_i32_0 = arith.constant 0 : i32
    %c0_i32_1 = arith.constant 0 : i32
    return %c0_i32, %c0_i32_0 : i32, i32
  }
  func.func @transform_2(%arg0: i32) -> (i32, i32) {
    %c0_i32 = arith.constant 0 : i32
    %c0_i32_0 = arith.constant 0 : i32
    return %c0_i32, %arg0 : i32, i32
  }
  func.func @transform_3(%arg0: i32) -> (i32, i32, i32) {
    %c0_i32 = arith.constant 0 : i32
    %c0_i32_0 = arith.constant 0 : i32
    %c0_i32_1 = arith.constant 0 : i32
    return %c0_i32, %c0_i32_0, %arg0 : i32, i32, i32
  }
  func.func @transform_4(%arg0: i32) -> (i32, i32) {
    %c0_i32 = arith.constant 0 : i32
    %c0_i32_0 = arith.constant 0 : i32
    return %c0_i32, %arg0 : i32, i32
  }
  func.func @transform_5(%arg0: i32) -> (i32, i32) {
    %c0_i32 = arith.constant 0 : i32
    %c0_i32_0 = arith.constant 0 : i32
    return %arg0, %c0_i32 : i32, i32
  }
  func.func @transform_6(%arg0: i32) -> (i32, i32) {
    %c0_i32 = arith.constant 0 : i32
    %c0_i32_0 = arith.constant 0 : i32
    return %c0_i32, %arg0 : i32, i32
  }
  func.func @transform_7(%arg0: i32) -> (i32, i32, i32) {
    %c0_i32 = arith.constant 0 : i32
    %c0_i32_0 = arith.constant 0 : i32
    %c0_i32_1 = arith.constant 0 : i32
    return %arg0, %c0_i32, %c0_i32_0 : i32, i32, i32
  }
  func.func @transform_8(%arg0: i32) -> (i32, i32, i32) {
    %c0_i32 = arith.constant 0 : i32
    %c0_i32_0 = arith.constant 0 : i32
    %c0_i32_1 = arith.constant 0 : i32
    return %arg0, %c0_i32, %c0_i32_0 : i32, i32, i32
  }
}

</mosaic_0001>

<bundles_post_ra>
// kernel: unet_innermost_forward.1
= control target key start
LH: loop header
LB: loop body
LE: loop exit
PB: predicated region body
PF: predicated region fallthrough
CT: control target
= control target key end

     0   :  { %s3394_s10 = smov 17   ;;  %s3395_s11 = smov 19   ;;  %vm1687_vm0 = vcmask 785408   ;;  %vm2295_vm1 = vcmask 1041408   ;;  %vm2288_vm2 = vcmask 15360   ;;  %s4339_s2 = inlined_call_operand.vmem [shape: bf16[1024,128], index: 2, kind: input, shape index: {}]   ;;  %s4340_s0 = inlined_call_operand.vmem [shape: bf16[32,1024], index: 0, kind: input, shape index: {}]   ;;  %s4341_s1 = inlined_call_operand.vmem [shape: bf16[128,864], index: 1, kind: input, shape index: {}]   ;;  %s4342_s3 = inlined_call_operand.vmem [shape: bf16[27,1,128], index: 3, kind: input, shape index: {}]   ;;  %s4343_s5 = inlined_call_operand.vmem [shape: f32[128,2], index: 5, kind: input, shape index: {}]   ;;  %s4344_s6 = inlined_call_operand.vmem [shape: bf16[128,128], index: 6, kind: output, shape index: {0}]   ;;  %s4345_s4 = inlined_call_operand.vmem [shape: f32[2,128], index: 4, kind: input, shape index: {}]   ;;  %s4346_s7 = inlined_call_operand.vmem [shape: f32[1,16,2], index: 7, kind: output, shape index: {1}]   ;;  %s4347_s8 = inlined_call_operand.vmem [shape: f32[1,16,2], index: 8, kind: output, shape index: {2}]  }
   0x1   :  { %v3249_v0 = vld [vmem:[%s4339_s2 + $0x78] sm:$0xff]   ;;  %v3253_v4 = vld [vmem:[%s4339_s2 + $0x70] sm:$0xff]   ;;  %v3257_v8 = vld [vmem:[%s4339_s2 + $0x68] sm:$0xff]   ;;  %s3396_s12 = smov 13   ;;  %s3397_s13 = smov 20  }
   0x2   :  { %v3250_v1 = vld [vmem:[%s4339_s2 + $0xf8] sm:$0xff]   ;;  %2763 = vmatprep.subr.bf16.mxu0 %v3249_v0  ;;  %v3254_v5 = vld [vmem:[%s4339_s2 + $0xf0] sm:$0xff]   ;;  %v3258_v9 = vld [vmem:[%s4339_s2 + $0xe8] sm:$0xff]   ;;  %s3398_s14 = smov 15   ;;  %s3399_s15 = smov 21  }
   0x3   :  { %v3251_v2 = vld [vmem:[%s4339_s2 + $0x38] sm:$0xff]   ;;  %2791 = vmatprep.subr.bf16.mxu1 %v3250_v1  ;;  %v3255_v6 = vld [vmem:[%s4339_s2 + $0x30] sm:$0xff]   ;;  %v3259_v10 = vld [vmem:[%s4339_s2 + $0x28] sm:$0xff]   ;;  %s3400_s18 = smov 16   ;;  %s3401_s19 = smov 3  }
   0x4   :  { %v3252_v3 = vld [vmem:[%s4339_s2 + $0xb8] sm:$0xff]   ;;  %2764 = vmatpush3.bf16.msra.mxu0 %v3251_v2  ;;  %v3256_v7 = vld [vmem:[%s4339_s2 + $0xb0] sm:$0xff]   ;;  %v3260_v11 = vld [vmem:[%s4339_s2 + $0xa8] sm:$0xff]   ;;  %s3402_s20 = smov 125   ;;  %s3403_s21 = smov 4  }
   0x5   :  { %2792 = vmatpush3.bf16.msra.mxu1 %v3252_v3  ;;  %2765 = vmatprep.subr.bf16.mxu0 %v3253_v4  ;;  %v3261_v12 = vld [vmem:[%s4339_s2 + $0x60] sm:$0xff]   ;;  %v3265_v16 = vld [vmem:[%s4339_s2 + $0x58] sm:$0xff]   ;;  %v3269_v20 = vld [vmem:[%s4339_s2 + $0x50] sm:$0xff]   ;;  %s3404_s22 = smov 127   ;;  %s3405_s23 = smov 5  }
   0x6   :  { %2793 = vmatprep.subr.bf16.mxu1 %v3254_v5  ;;  %v3262_v13 = vld [vmem:[%s4339_s2 + $0xe0] sm:$0xff]   ;;  %v3266_v17 = vld [vmem:[%s4339_s2 + $0xd8] sm:$0xff]   ;;  %v3270_v21 = vld [vmem:[%s4339_s2 + $0xd0] sm:$0xff]   ;;  %s3406_s24 = smov 11   ;;  %s3407_s26 = smov 1  }
   0x7   :  { %v3263_v14 = vld [vmem:[%s4339_s2 + $0x20] sm:$0xff]   ;;  %v3267_v18 = vld [vmem:[%s4339_s2 + $0x18] sm:$0xff]   ;;  %v3271_v22 = vld [vmem:[%s4339_s2 + $0x10] sm:$0xff]   ;;  %s3408_s27 = smov 116   ;;  %s3409_s28 = smov 111  }
   0x8   :  { %2766 = vmatpush3.bf16.msra.mxu0 %v3255_v6  ;;  %v3264_v15 = vld [vmem:[%s4339_s2 + $0xa0] sm:$0xff]   ;;  %v3268_v19 = vld [vmem:[%s4339_s2 + $0x98] sm:$0xff]   ;;  %v3272_v23 = vld [vmem:[%s4339_s2 + $0x90] sm:$0xff]   ;;  %s3410_s29 = smov 117   ;;  %s3411_s30 = smov 112  }
   0x9   :  { %2794 = vmatpush3.bf16.msra.mxu1 %v3256_v7  ;;  %2767 = vmatprep.subr.bf16.mxu0 %v3257_v8  ;;  %v3273_v24 = vld [vmem:[%s4339_s2 + $0x48] sm:$0xff]   ;;  %v3277_v28 = vld [vmem:[%s4339_s2 + $0x40] sm:$0xff]   ;;  %v3281_v40 = vld [vmem:[%s4339_s2 + $0x178] sm:$0xff]   ;;  %s3412_s9 = smov 123  }
   0xa   :  { %2795 = vmatprep.subr.bf16.mxu1 %v3258_v9  ;;  %v3274_v25 = vld [vmem:[%s4339_s2 + $0xc8] sm:$0xff]   ;;  %v3278_v29 = vld [vmem:[%s4339_s2 + $0xc0] sm:$0xff]   ;;  %v3282_v41 = vld [vmem:[%s4339_s2 + $0x1f8] sm:$0xff]  }
   0xb   :  { %v3275_v26 = vld [vmem:[%s4339_s2 + $0x8] sm:$0xff]   ;;  %v3279_v30 = vld [vmem:[%s4339_s2] sm:$0xff]   ;;  %v3283_v42 = vld [vmem:[%s4339_s2 + $0x138] sm:$0xff]  }
   0xc   :  { %2768 = vmatpush3.bf16.msra.mxu0 %v3259_v10  ;;  %v3276_v27 = vld [vmem:[%s4339_s2 + $0x88] sm:$0xff]   ;;  %v3280_v31 = vld [vmem:[%s4339_s2 + $0x80] sm:$0xff]   ;;  %v3284_v43 = vld [vmem:[%s4339_s2 + $0x1b8] sm:$0xff]  }
   0xd   :  { %2796 = vmatpush3.bf16.msra.mxu1 %v3260_v11  ;;  %2769 = vmatprep.subr.bf16.mxu0 %v3261_v12  ;;  %v27_v32 = vld [vmem:[%s4340_s0] sm:$0xff]  ;;  %v28_v34 = vld [vmem:[%s4340_s0 + $0x8] sm:$0xff]  ;;  %v3285_v44 = vld [vmem:[%s4339_s2 + $0x170] sm:$0xff]  }
   0xe   :  { %2797 = vmatprep.subr.bf16.mxu1 %v3262_v13  ;;  %v31_v33 = vld [vmem:[%s4340_s0 + $0x20] sm:$0xff]  ;;  %v32_v37 = vld [vmem:[%s4340_s0 + $0x28] sm:$0xff]  ;;  %v3286_v45 = vld [vmem:[%s4339_s2 + $0x1f0] sm:$0xff]  }
   0xf   :  { %v2511_v35 = vcombine.low %v27_v32, %v31_v33  ;;  %v2512_v36 = vcombine.high %v27_v32, %v31_v33  ;;  %v2513_v38 = vcombine.low %v28_v34, %v32_v37  ;;  %v2514_v39 = vcombine.high %v28_v34, %v32_v37  ;;  %v3287_v46 = vld [vmem:[%s4339_s2 + $0x130] sm:$0xff]   ;;  %v3289_v48 = vld [vmem:[%s4339_s2 + $0x168] sm:$0xff]   ;;  %v3293_v52 = vld [vmem:[%s4339_s2 + $0x160] sm:$0xff]  }
  0x10   :  { %2770 = vmatpush3.bf16.msra.mxu0 %v3263_v14  ;;  %v3288_v47 = vld [vmem:[%s4339_s2 + $0x1b0] sm:$0xff]   ;;  %v3290_v49 = vld [vmem:[%s4339_s2 + $0x1e8] sm:$0xff]   ;;  %v3294_v53 = vld [vmem:[%s4339_s2 + $0x1e0] sm:$0xff]  }
  0x11   :  { %2798 = vmatpush3.bf16.msra.mxu1 %v3264_v15  ;;  %2771 = vmatprep.subr.bf16.mxu0 %v3265_v16  ;;  %v3291_v50 = vld [vmem:[%s4339_s2 + $0x128] sm:$0xff]   ;;  %v3295_v54 = vld [vmem:[%s4339_s2 + $0x120] sm:$0xff]   ;;  %v3297_v56 = vld [vmem:[%s4339_s2 + $0x158] sm:$0xff]  }
  0x12   :  { %2799 = vmatprep.subr.bf16.mxu1 %v3266_v17  ;;  %667 = vmatprep.mubr.bf16.mxu0 %v2512_v36  ;;  %v3292_v51 = vld [vmem:[%s4339_s2 + $0x1a8] sm:$0xff]   ;;  %v3296_v55 = vld [vmem:[%s4339_s2 + $0x1a0] sm:$0xff]   ;;  %v3298_v57 = vld [vmem:[%s4339_s2 + $0x1d8] sm:$0xff]  }
  0x13   :  { %716 = vmatprep.mubr.bf16.mxu1 %v2514_v39  ;;  %v35_v58 = vld [vmem:[%s4340_s0 + $0x40] sm:$0xff]  ;;  %v36_v61 = vld [vmem:[%s4340_s0 + $0x48] sm:$0xff]  ;;  %v3299_v1 = vld [vmem:[%s4339_s2 + $0x118] sm:$0xff]  }
  0x14   :  { %2772 = vmatpush3.bf16.msra.mxu0 %v3267_v18  ;;  %v39_v59 = vld [vmem:[%s4340_s0 + $0x60] sm:$0xff]  ;;  %v40_v62 = vld [vmem:[%s4340_s0 + $0x68] sm:$0xff]  ;;  %v3300_v3 = vld [vmem:[%s4339_s2 + $0x198] sm:$0xff]  }
  0x15   :  { %2800 = vmatpush3.bf16.msra.mxu1 %v3268_v19  ;;  %2773 = vmatprep.subr.bf16.mxu0 %v3269_v20  ;;  %v2520_v60 = vcombine.high %v35_v58, %v39_v59  ;;  %v2519_v63 = vcombine.low %v35_v58, %v39_v59  ;;  %v2522_v0 = vcombine.high %v36_v61, %v40_v62  ;;  %v3301_v4 = vld [vmem:[%s4339_s2 + $0x150] sm:$0xff]   ;;  %v3305_v8 = vld [vmem:[%s4339_s2 + $0x148] sm:$0xff]   ;;  %v3309_v12 = vld [vmem:[%s4339_s2 + $0x140] sm:$0xff]  }
  0x16   :  { %2801 = vmatprep.subr.bf16.mxu1 %v3270_v21  ;;  %v2521_v2 = vcombine.low %v36_v61, %v40_v62  ;;  %v3302_v5 = vld [vmem:[%s4339_s2 + $0x1d0] sm:$0xff]   ;;  %v3306_v9 = vld [vmem:[%s4339_s2 + $0x1c8] sm:$0xff]   ;;  %v3310_v13 = vld [vmem:[%s4339_s2 + $0x1c0] sm:$0xff]  }
  0x17   :  { %v3303_v6 = vld [vmem:[%s4339_s2 + $0x110] sm:$0xff]   ;;  %v3307_v10 = vld [vmem:[%s4339_s2 + $0x108] sm:$0xff]   ;;  %v3311_v14 = vld [vmem:[%s4339_s2 + $0x100] sm:$0xff]  }
  0x18   :  { %2774 = vmatpush3.bf16.msra.mxu0 %v3271_v22  ;;  %v3304_v7 = vld [vmem:[%s4339_s2 + $0x190] sm:$0xff]   ;;  %v3308_v11 = vld [vmem:[%s4339_s2 + $0x188] sm:$0xff]   ;;  %v3312_v15 = vld [vmem:[%s4339_s2 + $0x180] sm:$0xff]  }
  0x19   :  { %2802 = vmatpush3.bf16.msra.mxu1 %v3272_v23  ;;  %2775 = vmatprep.subr.bf16.mxu0 %v3273_v24  ;;  %v29_v16 = vld [vmem:[%s4340_s0 + $0x10] sm:$0xff]  ;;  %v30_v18 = vld [vmem:[%s4340_s0 + $0x18] sm:$0xff] }
  0x1a   :  { %2803 = vmatprep.subr.bf16.mxu1 %v3274_v25  ;;  %v33_v17 = vld [vmem:[%s4340_s0 + $0x30] sm:$0xff]  ;;  %v34_v19 = vld [vmem:[%s4340_s0 + $0x38] sm:$0xff] }
  0x1b   :  { %v2515_v20 = vcombine.low %v29_v16, %v33_v17  ;;  %v2516_v21 = vcombine.high %v29_v16, %v33_v17  ;;  %v2517_v22 = vcombine.low %v30_v18, %v34_v19  ;;  %v2518_v23 = vcombine.high %v30_v18, %v34_v19  ;;  %v37_v24 = vld [vmem:[%s4340_s0 + $0x50] sm:$0xff] }
  0x1c   :  { %2776 = vmatpush3.bf16.msra.mxu0 %v3275_v26  ;;  %v41_v25 = vld [vmem:[%s4340_s0 + $0x70] sm:$0xff]  ;;  %v38_v26 = vld [vmem:[%s4340_s0 + $0x58] sm:$0xff] }
  0x1d   :  { %2804 = vmatpush3.bf16.msra.mxu1 %v3276_v27  ;;  %2777 = vmatprep.subr.bf16.mxu0 %v3277_v28  ;;  %v2524_v27 = vcombine.high %v37_v24, %v41_v25  ;;  %v42_v28 = vld [vmem:[%s4340_s0 + $0x78] sm:$0xff]  ;;  %s3393_s0 = smov 12  }
  0x1e   :  { %2805 = vmatprep.subr.bf16.mxu1 %v3278_v29  ;;  %v2526_v29 = vcombine.high %v38_v26, %v42_v28 }
  0x20   :  { %2778 = vmatpush3.bf16.msra.mxu0 %v3279_v30  ;;  %v2523_v30 = vcombine.low %v37_v24, %v41_v25 }
  0x21   :  { %2806 = vmatpush3.bf16.msra.mxu1 %v3280_v31  ;;  %2819 = vmatprep.subr.bf16.mxu0 %v3281_v40  ;;  %v2525_v31 = vcombine.low %v38_v26, %v42_v28 }
  0x22   :  { %2847 = vmatprep.subr.bf16.mxu1 %v3282_v41 }
  0x23   :  { %668 = vmatmul.mubr.bf16.vlgmr.msra.gmra.mxu0 %v2511_v35 }
  0x24   :  { %717 = vmatmul.mubr.bf16.vlgmr.msra.gmra.mxu1 %v2513_v38  ;;  %2820 = vmatpush3.bf16.msra.mxu0 %v3283_v42 }
  0x25   :  { %2848 = vmatpush3.bf16.msra.mxu1 %v3284_v43  ;;  %2821 = vmatprep.subr.bf16.mxu0 %v3285_v44 }
  0x26   :  { %2849 = vmatprep.subr.bf16.mxu1 %v3286_v45  ;;  %675 = vmatprep.mubr.bf16.mxu0 %v2520_v60 }
  0x27   :  { %724 = vmatprep.mubr.bf16.mxu1 %v2522_v0 }
  0x28   :  { %2822 = vmatpush3.bf16.msra.mxu0 %v3287_v46 }
  0x29   :  { %2850 = vmatpush3.bf16.msra.mxu1 %v3288_v47  ;;  %2823 = vmatprep.subr.bf16.mxu0 %v3289_v48 }
  0x2a   :  { %2851 = vmatprep.subr.bf16.mxu1 %v3290_v49 }
  0x2b   :  { %676 = vmatmul.mubr.bf16.gmra.mxu0 %v2519_v63 }
  0x2c   :  { %2824 = vmatpush3.bf16.msra.mxu0 %v3291_v50  ;;  %725 = vmatmul.mubr.bf16.gmra.mxu1 %v2521_v2 }
  0x2d   :  { %2852 = vmatpush3.bf16.msra.mxu1 %v3292_v51  ;;  %2825 = vmatprep.subr.bf16.mxu0 %v3293_v52 }
  0x2e   :  { %2853 = vmatprep.subr.bf16.mxu1 %v3294_v53  ;;  %765 = vmatprep.mubr.bf16.mxu0 %v2516_v21 }
  0x2f   :  { %814 = vmatprep.mubr.bf16.mxu1 %v2518_v23 }
  0x30   :  { %2826 = vmatpush3.bf16.msra.mxu0 %v3295_v54 }
  0x31   :  { %2854 = vmatpush3.bf16.msra.mxu1 %v3296_v55  ;;  %2827 = vmatprep.subr.bf16.mxu0 %v3297_v56 }
  0x32   :  { %2855 = vmatprep.subr.bf16.mxu1 %v3298_v57 }
  0x34   :  { %2828 = vmatpush3.bf16.msra.mxu0 %v3299_v1 }
  0x35   :  { %2856 = vmatpush3.bf16.msra.mxu1 %v3300_v3  ;;  %2829 = vmatprep.subr.bf16.mxu0 %v3301_v4 }
  0x36   :  { %2857 = vmatprep.subr.bf16.mxu1 %v3302_v5 }
  0x38   :  { %2830 = vmatpush3.bf16.msra.mxu0 %v3303_v6 }
  0x39   :  { %2858 = vmatpush3.bf16.msra.mxu1 %v3304_v7  ;;  %2831 = vmatprep.subr.bf16.mxu0 %v3305_v8 }
  0x3a   :  { %2859 = vmatprep.subr.bf16.mxu1 %v3306_v9 }
  0x3c   :  { %2832 = vmatpush3.bf16.msra.mxu0 %v3307_v10 }
  0x3d   :  { %2860 = vmatpush3.bf16.msra.mxu1 %v3308_v11  ;;  %2833 = vmatprep.subr.bf16.mxu0 %v3309_v12 }
  0x3e   :  { %2861 = vmatprep.subr.bf16.mxu1 %v3310_v13 }
  0x40   :  { %2834 = vmatpush3.bf16.msra.mxu0 %v3311_v14 }
  0x41   :  { %2862 = vmatpush3.bf16.msra.mxu1 %v3312_v15 }
  0x43   :  { %766 = vmatmul.mubr.bf16.vlgmr.msra.gmra.mxu0 %v2515_v20 }
  0x44   :  { %815 = vmatmul.mubr.bf16.vlgmr.msra.gmra.mxu1 %v2517_v22  ;;  %773 = vmatprep.mubr.bf16.mxu0 %v2524_v27 }
  0x45   :  { %822 = vmatprep.mubr.bf16.mxu1 %v2526_v29 }
  0x4b   :  { %774 = vmatmul.mubr.bf16.gmra.mxu0 %v2523_v30 }
  0x4c   :  { %823 = vmatmul.mubr.bf16.gmra.mxu1 %v2525_v31 }
  0xe3   :  { %v2779_v32 = vpop.f32.mrf.mxu0 }
  0xe4   :  { %v2807_v33 = vpop.f32.mrf.mxu1 }
  0xe5   :  { %v2780_v34 = vpop.f32.mrf.mxu0 }
  0xe6   :  { %v2808_v35 = vpop.f32.mrf.mxu1  ;;  %v2781_v48 = vadd.f32 %v2780_v34, %v2779_v32  ;;  %v3315_v34 = vld [vmem:[%s4341_s1 + $0x4] ss:$28 sps:$4 sm:$0xff]  }
  0xe7   :  { %v2782_v36 = vpop.f32.mrf.mxu0  ;;  %v2809_v49 = vadd.f32 %v2808_v35, %v2807_v33  ;;  %1744 = vmatprep.mubr.bf16.mxu0 %v3315_v34  ;;  %v3327_v35 = vld [vmem:[%s4341_s1 + $0xc] ss:$28 sps:$4 sm:$0xff]  }
  0xe8   :  { %v2810_v37 = vpop.f32.mrf.mxu1  ;;  %1841 = vmatprep.mubr.bf16.mxu1 %v3327_v35 }
  0xe9   :  { %v2783_v38 = vpop.f32.mrf.mxu0  ;;  %v719_v54 = vadd.f32 %v2809_v49, %v2781_v48 }
  0xea   :  { %v2811_v39 = vpop.f32.mrf.mxu1  ;;  %v2784_v55 = vadd.f32 %v2783_v38, %v2782_v36  ;;  %v851_v36 = vlaneseq }
  0xeb   :  { %v2785_v40 = vpop.f32.mrf.mxu0  ;;  %v2812_v56 = vadd.f32 %v2811_v39, %v2810_v37  ;;  %v2597_v37 = vld [vmem:[%s4342_s3 + $0x7] sm:$0x1] }
  0xec   :  { %v2813_v41 = vpop.f32.mrf.mxu1  ;;  %v852_v39 = vshrl.u32 %v851_v36, 7 }
  0xed   :  { %v2786_v42 = vpop.f32.mrf.mxu0  ;;  %v722_v1 = vadd.f32 %v2812_v56, %v2784_v55 }
  0xee   :  { %v2814_v43 = vpop.f32.mrf.mxu1  ;;  %v2787_v61 = vadd.f32 %v2786_v42, %v2785_v40  ;;  %v982_v40 = vpack.i.b16 %v2597_v37, %v2597_v37 }
  0xef   :  { %v2788_v44 = vpop.f32.mrf.mxu0  ;;  %v2815_v62 = vadd.f32 %v2814_v43, %v2813_v41  ;;  %v2593_v41 = vld [vmem:[%s4342_s3 + $0x3] sm:$0x1]  ;;  %v3772_v43 = vsub.s32 0, %v852_v39 }
  0xf0   :  { %v2816_v45 = vpop.f32.mrf.mxu1 }
  0xf1   :  { %v2789_v46 = vpop.f32.mrf.mxu0  ;;  %v727_v9 = vadd.f32 %v2815_v62, %v2787_v61 }
  0xf2   :  { %v2817_v47 = vpop.f32.mrf.mxu1  ;;  %v2790_v12 = vadd.f32 %v2789_v46, %v2788_v44  ;;  %v2596_v44 = vld [vmem:[%s4342_s3 + $0x6] sm:$0x1]  ;;  %v906_v46 = vpack.i.b16 %v2593_v41, %v2593_v41  ;;  %v2600_v41 = vld [vmem:[%s4342_s3 + $0xa] sm:$0x1] }
  0xf3   :  { %v2818_v13 = vadd.f32 %v2817_v47, %v2816_v45  ;;  %v987_v45 = vrot.slane %v982_v40, %v3772_v43  ;;  %v2604_v40 = vld [vmem:[%s4342_s3 + $0xe] sm:$0x1] }
  0xf5   :  { %v730_v23 = vadd.f32 %v2818_v13, %v2790_v12 }
 0x103   :  { %v2835_v50 = vpop.f32.mrf.mxu0 }
 0x104   :  { %v2863_v51 = vpop.f32.mrf.mxu1 }
 0x105   :  { %v2836_v52 = vpop.f32.mrf.mxu0 }
 0x106   :  { %v2864_v53 = vpop.f32.mrf.mxu1  ;;  %v2837_v57 = vadd.f32 %v2836_v52, %v2835_v50  ;;  %v963_v50 = vpack.i.b16 %v2596_v44, %v2596_v44  ;;  %v911_v52 = vrot.slane %v906_v46, %v3772_v43 }
 0x107   :  { %v2838_v58 = vpop.f32.mrf.mxu0  ;;  %v2865_v2 = vadd.f32 %v2864_v53, %v2863_v51  ;;  %v2592_v51 = vld [vmem:[%s4342_s3 + $0x2] sm:$0x1] }
 0x108   :  { %v2866_v59 = vpop.f32.mrf.mxu1  ;;  %v768_v60 = vadd.f32 %v2837_v57, %v719_v54  ;;  %v887_v55 = vpack.i.b16 %v2592_v51, %v2592_v51  ;;  %v968_v57 = vrot.slane %v963_v50, %v3772_v43  ;;  %v3313_v50 = vld [vmem:[%s4341_s1] ss:$28 sps:$4 sm:$0xff]  }
 0x109   :  { %v2839_v63 = vpop.f32.mrf.mxu0  ;;  %v3316_v51 = vld [vmem:[%s4341_s1 + $0x3c] ss:$28 sps:$4 sm:$0xff]  }
 0x10a   :  { %v2867_v0 = vpop.f32.mrf.mxu1  ;;  %v2840_v3 = vadd.f32 %v2839_v63, %v2838_v58  ;;  %v817_v6 = vadd.f32 %v2865_v2, %v768_v60  ;;  %v892_v63 = vrot.slane %v887_v55, %v3772_v43  ;;  %v2591_v2 = vld [vmem:[%s4342_s3 + $0x1] sm:$0x1] }
 0x10b   :  { %v2841_v4 = vpop.f32.mrf.mxu0  ;;  %v2868_v8 = vadd.f32 %v2867_v0, %v2866_v59  ;;  %v2595_v59 = vld [vmem:[%s4342_s3 + $0x5] sm:$0x1] }
 0x10c   :  { %v2869_v5 = vpop.f32.mrf.mxu1  ;;  %v771_v7 = vadd.f32 %v2840_v3, %v722_v1  ;;  %v831_v18 = vmax.f32 %v817_v6, 0.0  ;;  %v944_v1 = vpack.i.b16 %v2595_v59, %v2595_v59  ;;  %v868_v6 = vpack.i.b16 %v2591_v2, %v2591_v2 }
 0x10d   :  { %v2842_v10 = vpop.f32.mrf.mxu0 }
 0x10e   :  { %v2870_v11 = vpop.f32.mrf.mxu1  ;;  %v820_v14 = vadd.f32 %v2868_v8, %v771_v7  ;;  %v2843_v15 = vadd.f32 %v2842_v10, %v2841_v4  ;;  %v949_v8 = vrot.slane %v944_v1, %v3772_v43  ;;  %v873_v13 = vrot.slane %v868_v6, %v3772_v43  ;;  %v3318_v1 = vld [vmem:[%s4341_s1 + $0x38] ss:$28 sps:$4 sm:$0xff]   ;;  %v2602_v6 = vld [vmem:[%s4342_s3 + $0xc] sm:$0x1] }
 0x10f   :  { %v2844_v16 = vpop.f32.mrf.mxu0  ;;  %v2871_v25 = vadd.f32 %v2870_v11, %v2869_v5 }
 0x110   :  { %v2872_v17 = vpop.f32.mrf.mxu1  ;;  %v832_v19 = vmax.f32 %v820_v14, 0.0  ;;  %v776_v20 = vadd.f32 %v2843_v15, %v727_v9  ;;  %v2594_v9 = vld [vmem:[%s4342_s3 + $0x4] sm:$0x1] }
 0x111   :  { %v2845_v21 = vpop.f32.mrf.mxu0  ;;  %v925_v15 = vpack.i.b16 %v2594_v9, %v2594_v9 }
 0x112   :  { %v2873_v22 = vpop.f32.mrf.mxu1  ;;  %v3704_v24 = vpack.c.bf16 %v832_v19, %v831_v18  ;;  %v2846_v26 = vadd.f32 %v2845_v21, %v2844_v16  ;;  %v825_v27 = vadd.f32 %v2871_v25, %v776_v20  ;;  %v847_v16 = vld [vmem:[%s4342_s3] sm:$0x1]  ;;  %v2601_v25 = vld [vmem:[%s4342_s3 + $0xb] sm:$0x1] }
 0x113   :  { %v2874_v29 = vadd.f32 %v2873_v22, %v2872_v17  ;;  %v849_v20 = vpack.i.b16 %v847_v16, %v847_v16  ;;  %v930_v22 = vrot.slane %v925_v15, %v3772_v43 }
 0x114   :  { %v779_v28 = vadd.f32 %v2846_v26, %v730_v23  ;;  %971 = vrot.lane.b32.xlu1 %v3704_v24, %s3393_s0  ;;  %v833_v31 = vmax.f32 %v825_v27, 0.0  ;;  %v2605_v23 = vld [vmem:[%s4342_s3 + $0xf] sm:$0x1] }
 0x116   :  { %v828_v30 = vadd.f32 %v2874_v29, %v779_v28  ;;  %v854_v29 = vrot.slane %v849_v20, %v3772_v43 }
 0x118   :  { %v834_v32 = vmax.f32 %v828_v30, 0.0  ;;  %895 = vrot.lane.b32.xlu1 %v3704_v24, %s3394_s10 }
 0x11a   :  { %v3708_v33 = vpack.c.bf16 %v834_v32, %v833_v31  ;;  %v1126_v31 = vpack.i.b16 %v2605_v23, %v2605_v23  ;;  %v1058_v32 = vpack.i.b16 %v2601_v25, %v2601_v25 }
 0x11c   :  { %973 = vrot.lane.b32.xlu0 %v3708_v33, %s3393_s0  ;;  %878 = vrot.lane.b32.xlu1 %v3708_v33, %s3395_s11  ;;  %s3413_s0 = smov 113   ;;  %v1063_v39 = vrot.slane %v1058_v32, %v3772_v43 }
 0x120   :  { %897 = vrot.lane.b32.xlu0 %v3708_v33, %s3394_s10  ;;  %876 = vrot.lane.b32.xlu1 %v3704_v24, %s3395_s11  ;;  %s3414_s10 = smov 124   ;;  %s3415_s11 = smov 115  }
 0x124   :  { %954 = vrot.lane.b32.xlu0 %v3708_v33, %s3396_s12  ;;  %859 = vrot.lane.b32.xlu1 %v3708_v33, %s3397_s13 }
 0x128   :  { %952 = vrot.lane.b32.xlu0 %v3704_v24, %s3396_s12  ;;  %857 = vrot.lane.b32.xlu1 %v3704_v24, %s3397_s13  ;;  %s3416_s12 = smov 107   ;;  %s3417_s13 = smov 108  }
 0x12c   :  { %935 = vrot.lane.b32.xlu0 %v3708_v33, %s3398_s14  ;;  %841 = vrot.lane.b32.xlu1 %v3708_v33, %s3399_s15 }
 0x130   :  { %933 = vrot.lane.b32.xlu0 %v3704_v24, %s3398_s14  ;;  %839 = vrot.lane.b32.xlu1 %v3704_v24, %s3399_s15  ;;  %s3418_s14 = smov 109  }
 0x134   :  { %916 = vrot.lane.b32.xlu0 %v3708_v33, %s3400_s18  ;;  %1049 = vrot.lane.b32.xlu1 %v3708_v33, %s3401_s19 }
 0x138   :  { %914 = vrot.lane.b32.xlu0 %v3704_v24, %s3400_s18  ;;  %1047 = vrot.lane.b32.xlu1 %v3704_v24, %s3401_s19 }
 0x13c   :  { %1117 = vrot.lane.b32.xlu0 %v3708_v33, %s3402_s20  ;;  %1030 = vrot.lane.b32.xlu1 %v3708_v33, %s3403_s21 }
 0x140   :  { %1115 = vrot.lane.b32.xlu0 %v3704_v24, %s3402_s20  ;;  %1028 = vrot.lane.b32.xlu1 %v3704_v24, %s3403_s21 }
 0x144   :  { %1098 = vrot.lane.b32.xlu0 %v3708_v33, %s3404_s22  ;;  %1009 = vrot.lane.b32.xlu1 %v3704_v24, %s3405_s23 }
 0x148   :  { %1096 = vrot.lane.b32.xlu0 %v3704_v24, %s3404_s22  ;;  %992 = vrot.lane.b32.xlu1 %v3708_v33, %s3406_s24 }
 0x14c   :  { %1011 = vrot.lane.b32.xlu0 %v3708_v33, %s3405_s23  ;;  %990 = vrot.lane.b32.xlu1 %v3704_v24, %s3406_s24 }
 0x150   :  { %1068 = vrot.lane.b32.xlu0 %v3708_v33, %s3407_s26  ;;  %1193 = vrot.lane.b32.xlu1 %v3708_v33, %s3408_s27 }
 0x154   :  { %1066 = vrot.lane.b32.xlu0 %v3704_v24, %s3407_s26  ;;  %1191 = vrot.lane.b32.xlu1 %v3704_v24, %s3408_s27 }
 0x158   :  { %1269 = vrot.lane.b32.xlu0 %v3708_v33, %s3409_s28  ;;  %1174 = vrot.lane.b32.xlu1 %v3708_v33, %s3410_s29 }
 0x15c   :  { %1267 = vrot.lane.b32.xlu0 %v3704_v24, %s3409_s28  ;;  %1172 = vrot.lane.b32.xlu1 %v3704_v24, %s3410_s29 }
 0x160   :  { %1250 = vrot.lane.b32.xlu0 %v3708_v33, %s3411_s30  ;;  %1155 = vrot.lane.b32.xlu1 %v3708_v33, %s3412_s9 }
 0x164   :  { %1248 = vrot.lane.b32.xlu0 %v3704_v24, %s3411_s30  ;;  %1153 = vrot.lane.b32.xlu1 %v3704_v24, %s3412_s9 }
 0x168   :  { %1231 = vrot.lane.b32.xlu0 %v3708_v33, %s3413_s0  ;;  %1136 = vrot.lane.b32.xlu1 %v3708_v33, %s3414_s10 }
 0x16c   :  { %1229 = vrot.lane.b32.xlu0 %v3704_v24, %s3413_s0  ;;  %1134 = vrot.lane.b32.xlu1 %v3704_v24, %s3414_s10 }
 0x170   :  { %1212 = vrot.lane.b32.xlu0 %v3708_v33, %s3415_s11  ;;  %1324 = vrot.lane.b32.xlu1 %v3704_v24, %s3416_s12 }
 0x174   :  { %1210 = vrot.lane.b32.xlu0 %v3704_v24, %s3415_s11  ;;  %1305 = vrot.lane.b32.xlu1 %v3704_v24, %s3417_s13 }
 0x178   :  { %1326 = vrot.lane.b32.xlu0 %v3708_v33, %s3416_s12  ;;  %1286 = vrot.lane.b32.xlu1 %v3704_v24, %s3418_s14 }
 0x17c   :  { %1307 = vrot.lane.b32.xlu0 %v3708_v33, %s3417_s13 }
 0x180   :  { %1288 = vrot.lane.b32.xlu0 %v3708_v33, %s3418_s14 }
 0x186   :  { %v972_v38 = vpop.permute.xlu1 %971 }
 0x187   :  { %v988_v58 = vmul.bf16 %v987_v45, %v972_v38  ;;  %v1131_v38 = vrot.slane %v1126_v31, %v3772_v43 }
 0x18a   :  { %v896_v42 = vpop.permute.xlu1 %895 }
 0x18b   :  { %v912_v62 = vmul.bf16 %v911_v52, %v896_v42 }
 0x18e   :  { %v974_v47 = vpop.permute.xlu0 %973  ;;  %v879_v48 = vpop.permute.xlu1 %878 }
 0x18f   :  { %v989_v49 = vmul.bf16 %v987_v45, %v974_v47  ;;  %v894_v5 = vmul.bf16 %v892_v63, %v879_v48  ;;  %v1107_v47 = vpack.i.b16 %v2604_v40, %v2604_v40  ;;  %v3328_v40 = vld [vmem:[%s4341_s1 + $0xe4] ss:$28 sps:$4 sm:$0xff]  }
 0x191   :  { %2875 = vmatprep.subr.bf16.mxu0 %v989_v49  ;;  %v1039_v49 = vpack.i.b16 %v2600_v41, %v2600_v41  ;;  %v1112_v55 = vrot.slane %v1107_v47, %v3772_v43 }
 0x192   :  { %v898_v53 = vpop.permute.xlu0 %897  ;;  %v877_v54 = vpop.permute.xlu1 %876 }
 0x193   :  { %v913_v56 = vmul.bf16 %v911_v52, %v898_v53  ;;  %v893_v12 = vmul.bf16 %v892_v63, %v877_v54 }
 0x195   :  { %2876 = vmatpush3.bf16.msra.mxu0 %v913_v56 }
 0x196   :  { %v955_v60 = vpop.permute.xlu0 %954  ;;  %2877 = vmatprep.subr.bf16.mxu0 %v988_v58  ;;  %v860_v61 = vpop.permute.xlu1 %859  ;;  %v2603_v58 = vld [vmem:[%s4342_s3 + $0xd] sm:$0x1] }
 0x197   :  { %v970_v0 = vmul.bf16 %v968_v57, %v955_v60  ;;  %v875_v19 = vmul.bf16 %v873_v13, %v860_v61  ;;  %v2599_v60 = vld [vmem:[%s4342_s3 + $0x9] sm:$0x1]  ;;  %v1088_v63 = vpack.i.b16 %v2603_v58, %v2603_v58  ;;  %v2611_v58 = vld [vmem:[%s4342_s3 + $0x15] sm:$0x1] }
 0x198   :  { %v1020_v2 = vpack.i.b16 %v2599_v60, %v2599_v60  ;;  %v3334_v60 = vld [vmem:[%s4341_s1 + $0x11c] ss:$28 sps:$4 sm:$0xff]  }
 0x199   :  { %2878 = vmatpush3.bf16.msra.mxu0 %v912_v62 }
 0x19a   :  { %v953_v3 = vpop.permute.xlu0 %952  ;;  %2879 = vmatprep.subr.bf16.mxu0 %v970_v0  ;;  %v858_v4 = vpop.permute.xlu1 %857 }
 0x19b   :  { %v969_v7 = vmul.bf16 %v968_v57, %v953_v3  ;;  %v874_v28 = vmul.bf16 %v873_v13, %v858_v4  ;;  %v1044_v57 = vrot.slane %v1039_v49, %v3772_v43  ;;  %v3319_v3 = vld [vmem:[%s4341_s1 + $0x74] ss:$28 sps:$4 sm:$0xff]   ;;  %v1077_v13 = vpack.i.b16 %v2602_v6, %v2602_v6  ;;  %v3325_v49 = vld [vmem:[%s4341_s1 + $0x8] ss:$28 sps:$4 sm:$0xff]  }
 0x19d   :  { %2880 = vmatpush3.bf16.msra.mxu0 %v894_v5  ;;  %v1082_v20 = vrot.slane %v1077_v13, %v3772_v43  ;;  %v2606_v13 = vld [vmem:[%s4342_s3 + $0x10] sm:$0x1] }
 0x19e   :  { %v936_v10 = vpop.permute.xlu0 %935  ;;  %2881 = vmatprep.subr.bf16.mxu0 %v969_v7  ;;  %v842_v11 = vpop.permute.xlu1 %841 }
 0x19f   :  { %v951_v14 = vmul.bf16 %v949_v8, %v936_v10  ;;  %v856_v36 = vmul.bf16 %v854_v29, %v842_v11  ;;  %v1025_v10 = vrot.slane %v1020_v2, %v3772_v43  ;;  %v2598_v11 = vld [vmem:[%s4342_s3 + $0x8] sm:$0x1] }
 0x1a1   :  { %2882 = vmatpush3.bf16.msra.mxu0 %v893_v12 }
 0x1a2   :  { %v934_v17 = vpop.permute.xlu0 %933  ;;  %2883 = vmatprep.subr.bf16.mxu0 %v951_v14  ;;  %v840_v18 = vpop.permute.xlu1 %839 }
 0x1a3   :  { %v950_v21 = vmul.bf16 %v949_v8, %v934_v17  ;;  %v855_v45 = vmul.bf16 %v854_v29, %v840_v18  ;;  %v1093_v8 = vrot.slane %v1088_v63, %v3772_v43  ;;  %v1001_v17 = vpack.i.b16 %v2598_v11, %v2598_v11  ;;  %v3321_v18 = vld [vmem:[%s4341_s1 + $0x70] ss:$28 sps:$4 sm:$0xff]   ;;  %v3336_v11 = vld [vmem:[%s4341_s1 + $0x118] ss:$28 sps:$4 sm:$0xff]  }
 0x1a5   :  { %2884 = vmatpush3.bf16.msra.mxu0 %v875_v19  ;;  %v1095_v12 = vmul.bf16 %v1093_v8, %v3708_v33  ;;  %v2613_v19 = vld [vmem:[%s4342_s3 + $0x17] sm:$0x1]  ;;  %v2609_v33 = vld [vmem:[%s4342_s3 + $0x13] sm:$0x1] }
 0x1a6   :  { %v917_v26 = vpop.permute.xlu0 %916  ;;  %2885 = vmatprep.subr.bf16.mxu0 %v950_v21  ;;  %v1050_v27 = vpop.permute.xlu1 %1049  ;;  %v1094_v21 = vmul.bf16 %v1093_v8, %v3704_v24  ;;  %v1202_v29 = vpack.i.b16 %v2609_v33, %v2609_v33 }
 0x1a7   :  { %v932_v30 = vmul.bf16 %v930_v22, %v917_v26  ;;  %v1065_v48 = vmul.bf16 %v1063_v39, %v1050_v27  ;;  %v1278_v26 = vpack.i.b16 %v2613_v19, %v2613_v19  ;;  %v1145_v19 = vpack.i.b16 %v2606_v13, %v2606_v13  ;;  %v3375_v13 = vld [vmem:[%s4341_s1 + $0xf4] ss:$28 sps:$4 sm:$0xff]  }
 0x1a9   :  { %2886 = vmatpush3.bf16.msra.mxu0 %v874_v28  ;;  %v1006_v28 = vrot.slane %v1001_v17, %v3772_v43  ;;  %v1283_v24 = vrot.slane %v1278_v26, %v3772_v43 }
 0x1aa   :  { %v915_v34 = vpop.permute.xlu0 %914  ;;  %2887 = vmatprep.subr.bf16.mxu0 %v932_v30  ;;  %v1048_v35 = vpop.permute.xlu1 %1047 }
 0x1ab   :  { %v931_v37 = vmul.bf16 %v930_v22, %v915_v34  ;;  %v1064_v56 = vmul.bf16 %v1063_v39, %v1048_v35  ;;  %v3322_v22 = vld [vmem:[%s4341_s1 + $0xac] ss:$28 sps:$4 sm:$0xff]   ;;  %v1207_v35 = vrot.slane %v1202_v29, %v3772_v43  ;;  %v2608_v39 = vld [vmem:[%s4342_s3 + $0x12] sm:$0x1] }
 0x1ac   :  { %v3346_v29 = vld [vmem:[%s4341_s1 + $0x18c] ss:$28 sps:$4 sm:$0xff]  }
 0x1ad   :  { %2888 = vmatpush3.bf16.msra.mxu0 %v856_v36  ;;  %v3324_v36 = vld [vmem:[%s4341_s1 + $0xa8] ss:$28 sps:$4 sm:$0xff]  }
 0x1ae   :  { %v1118_v42 = vpop.permute.xlu0 %1117  ;;  %2889 = vmatprep.subr.bf16.mxu0 %v931_v37  ;;  %v1031_v44 = vpop.permute.xlu1 %1030  ;;  %v2612_v37 = vld [vmem:[%s4342_s3 + $0x16] sm:$0x1] }
 0x1af   :  { %v1133_v46 = vmul.bf16 %v1131_v38, %v1118_v42  ;;  %v1046_v0 = vmul.bf16 %v1044_v57, %v1031_v44 }
 0x1b1   :  { %2890 = vmatpush3.bf16.msra.mxu0 %v855_v45  ;;  %2939 = vmatprep.subr.bf16.mxu1 %v1133_v46  ;;  %v1259_v45 = vpack.i.b16 %v2612_v37, %v2612_v37 }
 0x1b2   :  { %v1116_v52 = vpop.permute.xlu0 %1115  ;;  %2940 = vmatpush3.bf16.msra.mxu1 %v1065_v48  ;;  %v1029_v53 = vpop.permute.xlu1 %1028  ;;  %v1183_v48 = vpack.i.b16 %v2608_v39, %v2608_v39 }
 0x1b3   :  { %v1132_v54 = vmul.bf16 %v1131_v38, %v1116_v52  ;;  %v1045_v9 = vmul.bf16 %v1044_v57, %v1029_v53  ;;  %v3331_v52 = vld [vmem:[%s4341_s1 + $0x44] ss:$28 sps:$4 sm:$0xff]  }
 0x1b4   :  { %1745 = vmatmul.mubr.bf16.vlgmr.msra.gmra.mxu0 %v3313_v50  ;;  %v3330_v57 = vld [vmem:[%s4341_s1 + $0xe0] ss:$28 sps:$4 sm:$0xff]  }
 0x1b5   :  { %2941 = vmatprep.subr.bf16.mxu1 %v1132_v54  ;;  %1752 = vmatprep.mubr.bf16.mxu0 %v3316_v51  ;;  %v1264_v54 = vrot.slane %v1259_v45, %v3772_v43  ;;  %v3354_v45 = vld [vmem:[%s4341_s1 + $0x14] ss:$28 sps:$4 sm:$0xff]  }
 0x1b6   :  { %v1099_v59 = vpop.permute.xlu0 %1098  ;;  %2942 = vmatpush3.bf16.msra.mxu1 %v1064_v56  ;;  %v1010_v61 = vpop.permute.xlu1 %1009  ;;  %v1188_v56 = vrot.slane %v1183_v48, %v3772_v43 }
 0x1b7   :  { %v1114_v62 = vmul.bf16 %v1112_v55, %v1099_v59  ;;  %v1026_v27 = vmul.bf16 %v1025_v10, %v1010_v61  ;;  %v2607_v59 = vld [vmem:[%s4342_s3 + $0x11] sm:$0x1] }
 0x1b8   :  { %v1164_v2 = vpack.i.b16 %v2607_v59, %v2607_v59 }
 0x1b9   :  { %2943 = vmatprep.subr.bf16.mxu1 %v1114_v62 }
 0x1ba   :  { %v1097_v4 = vpop.permute.xlu0 %1096  ;;  %2944 = vmatpush3.bf16.msra.mxu1 %v1046_v0  ;;  %v993_v5 = vpop.permute.xlu1 %992  ;;  %v1240_v0 = vpack.i.b16 %v2611_v58, %v2611_v58  ;;  %v3358_v58 = vld [vmem:[%s4341_s1 + $0x4c] ss:$28 sps:$4 sm:$0xff]  }
 0x1bb   :  { %v1113_v7 = vmul.bf16 %v1112_v55, %v1097_v4  ;;  %v1008_v34 = vmul.bf16 %v1006_v28, %v993_v5  ;;  %v3337_v5 = vld [vmem:[%s4341_s1 + $0x7c] ss:$28 sps:$4 sm:$0xff]  }
 0x1bc   :  { %1753 = vmatmul.mubr.bf16.gmra.mxu0 %v3318_v1 }
 0x1bd   :  { %2945 = vmatprep.subr.bf16.mxu1 %v1113_v7  ;;  %1760 = vmatprep.mubr.bf16.mxu0 %v3319_v3  ;;  %v3333_v3 = vld [vmem:[%s4341_s1 + $0x40] ss:$28 sps:$4 sm:$0xff]   ;;  %v1245_v7 = vrot.slane %v1240_v0, %v3772_v43 }
 0x1be   :  { %v1012_v14 = vpop.permute.xlu0 %1011  ;;  %2946 = vmatpush3.bf16.msra.mxu1 %v1045_v9  ;;  %v991_v15 = vpop.permute.xlu1 %990  ;;  %v1169_v9 = vrot.slane %v1164_v2, %v3772_v43  ;;  %v3361_v0 = vld [vmem:[%s4341_s1 + $0x15c] ss:$28 sps:$4 sm:$0xff]   ;;  %v3360_v2 = vld [vmem:[%s4341_s1 + $0x48] ss:$28 sps:$4 sm:$0xff]  }
 0x1bf   :  { %v1027_v16 = vmul.bf16 %v1025_v10, %v1012_v14  ;;  %2947 = vmatprep.subr.bf16.mxu1 %v1095_v12  ;;  %v1007_v46 = vmul.bf16 %v1006_v28, %v991_v15  ;;  %v2610_v12 = vld [vmem:[%s4342_s3 + $0x14] sm:$0x1]  ;;  %v3342_v28 = vld [vmem:[%s4341_s1 + $0x150] ss:$28 sps:$4 sm:$0xff]  }
 0x1c0   :  { %v3340_v14 = vld [vmem:[%s4341_s1 + $0x154] ss:$28 sps:$4 sm:$0xff]   ;;  %v1221_v17 = vpack.i.b16 %v2610_v12, %v2610_v12 }
 0x1c1   :  { %v3372_v12 = vld [vmem:[%s4341_s1 + $0xb8] ss:$28 sps:$4 sm:$0xff]  }
 0x1c2   :  { %v1069_v23 = vpop.permute.xlu0 %1068  ;;  %2948 = vmatpush3.bf16.msra.mxu1 %v1027_v16  ;;  %v1194_v25 = vpop.permute.xlu1 %1193 }
 0x1c3   :  { %2949 = vmatprep.subr.bf16.mxu1 %v1094_v21  ;;  %v1084_v30 = vmul.bf16 %v1082_v20, %v1069_v23  ;;  %v1209_v47 = vmul.bf16 %v1207_v35, %v1194_v25  ;;  %v1226_v25 = vrot.slane %v1221_v17, %v3772_v43  ;;  %v3380_v17 = vld [vmem:[%s4341_s1 + $0x12c] ss:$28 sps:$4 sm:$0xff]  }
 0x1c4   :  { %1761 = vmatmul.mubr.bf16.gmra.mxu0 %v3321_v18 }
 0x1c5   :  { %1768 = vmatprep.mubr.bf16.mxu0 %v3322_v22  ;;  %v3343_v22 = vld [vmem:[%s4341_s1 + $0xb4] ss:$28 sps:$4 sm:$0xff]  }
 0x1c6   :  { %v1067_v31 = vpop.permute.xlu0 %1066  ;;  %v1192_v32 = vpop.permute.xlu1 %1191  ;;  %2950 = vmatpush3.bf16.msra.mxu1 %v1026_v27  ;;  %v1150_v27 = vrot.slane %v1145_v19, %v3772_v43  ;;  %v3383_v19 = vld [vmem:[%s4341_s1 + $0xf8] ss:$28 sps:$4 sm:$0xff]  }
 0x1c7   :  { %2951 = vmatprep.subr.bf16.mxu1 %v1084_v30  ;;  %v1083_v38 = vmul.bf16 %v1082_v20, %v1067_v31  ;;  %v1208_v55 = vmul.bf16 %v1207_v35, %v1192_v32  ;;  %v3339_v20 = vld [vmem:[%s4341_s1 + $0x78] ss:$28 sps:$4 sm:$0xff]  }
 0x1c8   :  { %v2616_v31 = vld [vmem:[%s4342_s3 + $0x1a] sm:$0x1] }
 0x1c9   :  { %v1335_v35 = vpack.i.b16 %v2616_v31, %v2616_v31  ;;  %v2206_v31 = vld [vmem:[%s4343_s5 + $0x60] sm:$0xff] }
 0x1ca   :  { %v1270_v41 = vpop.permute.xlu0 %1269  ;;  %v1175_v42 = vpop.permute.xlu1 %1174  ;;  %2952 = vmatpush3.bf16.msra.mxu1 %v1008_v34 }
 0x1cb   :  { %v1285_v44 = vmul.bf16 %v1283_v24, %v1270_v41  ;;  %2953 = vmatprep.subr.bf16.mxu1 %v1083_v38  ;;  %v1190_v1 = vmul.bf16 %v1188_v56, %v1175_v42  ;;  %v3349_v38 = vld [vmem:[%s4341_s1 + $0xec] ss:$28 sps:$4 sm:$0xff]   ;;  %v2615_v41 = vld [vmem:[%s4342_s3 + $0x19] sm:$0x1] }
 0x1cc   :  { %1769 = vmatmul.mubr.bf16.gmra.mxu0 %v3324_v36  ;;  %v3345_v36 = vld [vmem:[%s4341_s1 + $0xb0] ss:$28 sps:$4 sm:$0xff]   ;;  %v3348_v42 = vld [vmem:[%s4341_s1 + $0x188] ss:$28 sps:$4 sm:$0xff]   ;;  %v1316_v48 = vpack.i.b16 %v2615_v41, %v2615_v41 }
 0x1cd   :  { %3003 = vmatprep.subr.bf16.mxu0 %v1285_v44  ;;  %1776 = vmatprep.mubr.bf16.mxu0 %v3328_v40  ;;  %v1340_v44 = vrot.slane %v1335_v35, %v3772_v43  ;;  %v2202_v35 = vld [vmem:[%s4343_s5 + $0x40] sm:$0xff] }
 0x1ce   :  { %v1268_v50 = vpop.permute.xlu0 %1267  ;;  %3004 = vmatpush3.bf16.msra.mxu0 %v1209_v47  ;;  %v1173_v51 = vpop.permute.xlu1 %1172  ;;  %2954 = vmatpush3.bf16.msra.mxu1 %v1007_v46 }
 0x1cf   :  { %v1284_v53 = vmul.bf16 %v1283_v24, %v1268_v50  ;;  %v1189_v8 = vmul.bf16 %v1188_v56, %v1173_v51  ;;  %v3351_v51 = vld [vmem:[%s4341_s1 + $0xe8] ss:$28 sps:$4 sm:$0xff]   ;;  %v3352_v56 = vld [vmem:[%s4341_s1 + $0x10] ss:$28 sps:$4 sm:$0xff]  }
 0x1d1   :  { %1842 = vmatmul.mubr.bf16.vlgmr.msra.gmra.mxu1 %v3325_v49  ;;  %3005 = vmatprep.subr.bf16.mxu0 %v1284_v53  ;;  %v3355_v53 = vld [vmem:[%s4341_s1 + $0x124] ss:$28 sps:$4 sm:$0xff]  }
 0x1d2   :  { %v1251_v61 = vpop.permute.xlu0 %1250  ;;  %3006 = vmatpush3.bf16.msra.mxu0 %v1208_v55  ;;  %v1156_v62 = vpop.permute.xlu1 %1155  ;;  %1849 = vmatprep.mubr.bf16.mxu1 %v3331_v52  ;;  %v2614_v55 = vld [vmem:[%s4342_s3 + $0x18] sm:$0x1] }
 0x1d3   :  { %v1266_v63 = vmul.bf16 %v1264_v54, %v1251_v61  ;;  %v1171_v18 = vmul.bf16 %v1169_v9, %v1156_v62  ;;  %v3357_v62 = vld [vmem:[%s4341_s1 + $0x120] ss:$28 sps:$4 sm:$0xff]  }
 0x1d4   :  { %1777 = vmatmul.mubr.bf16.gmra.mxu0 %v3330_v57 }
 0x1d5   :  { %3007 = vmatprep.subr.bf16.mxu0 %v1266_v63  ;;  %1784 = vmatprep.mubr.bf16.mxu0 %v3334_v60  ;;  %v1297_v60 = vpack.i.b16 %v2614_v55, %v2614_v55 }
 0x1d6   :  { %v1249_v4 = vpop.permute.xlu0 %1248  ;;  %3008 = vmatpush3.bf16.msra.mxu0 %v1190_v1  ;;  %v1154_v10 = vpop.permute.xlu1 %1153 }
 0x1d7   :  { %v1265_v6 = vmul.bf16 %v1264_v54, %v1249_v4  ;;  %v1170_v26 = vmul.bf16 %v1169_v9, %v1154_v10  ;;  %v1321_v54 = vrot.slane %v1316_v48, %v3772_v43  ;;  %v1302_v1 = vrot.slane %v1297_v60, %v3772_v43  ;;  %v3364_v4 = vld [vmem:[%s4341_s1 + $0x84] ss:$28 sps:$4 sm:$0xff]   ;;  %v3363_v43 = vld [vmem:[%s4341_s1 + $0x158] ss:$28 sps:$4 sm:$0xff]   ;;  %v3369_v10 = vld [vmem:[%s4341_s1 + $0x190] ss:$28 sps:$4 sm:$0xff]  }
 0x1d8   :  { %v3370_v9 = vld [vmem:[%s4341_s1 + $0xbc] ss:$28 sps:$4 sm:$0xff]   ;;  %v2194_v48 = vld [vmem:[%s4343_s5] sm:$0xff] }
 0x1d9   :  { %1850 = vmatmul.mubr.bf16.gmra.mxu1 %v3333_v3  ;;  %3009 = vmatprep.subr.bf16.mxu0 %v1265_v6 }
 0x1da   :  { %v1232_v15 = vpop.permute.xlu0 %1231  ;;  %3010 = vmatpush3.bf16.msra.mxu0 %v1189_v8  ;;  %1857 = vmatprep.mubr.bf16.mxu1 %v3337_v5  ;;  %v1137_v33 = vpop.permute.xlu1 %1136  ;;  %v3366_v8 = vld [vmem:[%s4341_s1 + $0x80] ss:$28 sps:$4 sm:$0xff]  }
 0x1db   :  { %v1247_v16 = vmul.bf16 %v1245_v7, %v1232_v15  ;;  %v1152_v24 = vmul.bf16 %v1150_v27, %v1137_v33  ;;  %v3378_v15 = vld [vmem:[%s4341_s1 + $0x88] ss:$28 sps:$4 sm:$0xff]  }
 0x1dc   :  { %1785 = vmatmul.mubr.bf16.gmra.mxu0 %v3336_v11  ;;  %v3373_v11 = vld [vmem:[%s4341_s1 + $0x18] ss:$28 sps:$4 sm:$0xff]   ;;  %v3385_v33 = vld [vmem:[%s4341_s1 + $0x164] ss:$28 sps:$4 sm:$0xff]  }
 0x1dd   :  { %3011 = vmatprep.subr.bf16.mxu0 %v1247_v16  ;;  %1792 = vmatprep.mubr.bf16.mxu0 %v3340_v14  ;;  %v3374_v14 = vld [vmem:[%s4341_s1 + $0x50] ss:$28 sps:$4 sm:$0xff]  }
 0x1de   :  { %v1230_v21 = vpop.permute.xlu0 %1229  ;;  %3012 = vmatpush3.bf16.msra.mxu0 %v1171_v18  ;;  %v1135_v34 = vpop.permute.xlu1 %1134  ;;  %v3377_v16 = vld [vmem:[%s4341_s1 + $0xf0] ss:$28 sps:$4 sm:$0xff]   ;;  %v3379_v18 = vld [vmem:[%s4341_s1 + $0xc0] ss:$28 sps:$4 sm:$0xff]  }
 0x1df   :  { %v1246_v23 = vmul.bf16 %v1245_v7, %v1230_v21  ;;  %v1151_v40 = vmul.bf16 %v1150_v27, %v1135_v34  ;;  %v3367_v7 = vld [vmem:[%s4341_s1 + $0x194] ss:$28 sps:$4 sm:$0xff]   ;;  %v2203_v34 = vld [vmem:[%s4343_s5 + $0x48] sm:$0xff] }
 0x1e0   :  { %v3384_v21 = vld [vmem:[%s4341_s1 + $0x130] ss:$28 sps:$4 sm:$0xff]   ;;  %v3392_v27 = vld [vmem:[%s4341_s1 + $0x198] ss:$28 sps:$4 sm:$0xff]  }
 0x1e1   :  { %1858 = vmatmul.mubr.bf16.gmra.mxu1 %v3339_v20  ;;  %3013 = vmatprep.subr.bf16.mxu0 %v1246_v23  ;;  %v3382_v20 = vld [vmem:[%s4341_s1 + $0x128] ss:$28 sps:$4 sm:$0xff]   ;;  %v3387_v23 = vld [vmem:[%s4341_s1 + $0x160] ss:$28 sps:$4 sm:$0xff]  }
 0x1e2   :  { %v1213_v30 = vpop.permute.xlu0 %1212  ;;  %3014 = vmatpush3.bf16.msra.mxu0 %v1170_v26  ;;  %1865 = vmatprep.mubr.bf16.mxu1 %v3343_v22  ;;  %v1325_v46 = vpop.permute.xlu1 %1324  ;;  %v3388_v22 = vld [vmem:[%s4341_s1 + $0x168] ss:$28 sps:$4 sm:$0xff]   ;;  %v3389_v26 = vld [vmem:[%s4341_s1 + $0x1a0] ss:$28 sps:$4 sm:$0xff]  }
 0x1e3   :  { %v1228_v32 = vmul.bf16 %v1226_v25, %v1213_v30  ;;  %v1341_v50 = vmul.bf16 %v1340_v44, %v1325_v46  ;;  %v2207_v30 = vld [vmem:[%s4343_s5 + $0x68] sm:$0xff] }
 0x1e4   :  { %1793 = vmatmul.mubr.bf16.gmra.mxu0 %v3342_v28  ;;  %v2209_v28 = vld [vmem:[%s4343_s5 + $0x78] sm:$0xff] }
 0x1e5   :  { %3015 = vmatprep.subr.bf16.mxu0 %v1228_v32  ;;  %1800 = vmatprep.mubr.bf16.mxu0 %v3346_v29  ;;  %v2208_v29 = vld [vmem:[%s4343_s5 + $0x70] sm:$0xff]  ;;  %v2205_v32 = vld [vmem:[%s4343_s5 + $0x58] sm:$0xff] }
 0x1e6   :  { %v1211_v37 = vpop.permute.xlu0 %1210  ;;  %3016 = vmatpush3.bf16.msra.mxu0 %v1152_v24  ;;  %v1306_v59 = vpop.permute.xlu1 %1305  ;;  %v2204_v24 = vld [vmem:[%s4343_s5 + $0x50] sm:$0xff] }
 0x1e7   :  { %v1227_v39 = vmul.bf16 %v1226_v25, %v1211_v37  ;;  %v1322_v61 = vmul.bf16 %v1321_v54, %v1306_v59  ;;  %v3390_v25 = vld [vmem:[%s4341_s1 + $0x19c] ss:$28 sps:$4 sm:$0xff]   ;;  %v2200_v37 = vld [vmem:[%s4343_s5 + $0x30] sm:$0xff] }
 0x1e9   :  { %1866 = vmatmul.mubr.bf16.gmra.mxu1 %v3345_v36  ;;  %3017 = vmatprep.subr.bf16.mxu0 %v1227_v39  ;;  %v2201_v36 = vld [vmem:[%s4343_s5 + $0x38] sm:$0xff]  ;;  %v2198_v39 = vld [vmem:[%s4343_s5 + $0x20] sm:$0xff] }
 0x1ea   :  { %v1327_v47 = vpop.permute.xlu0 %1326  ;;  %3018 = vmatpush3.bf16.msra.mxu0 %v1151_v40  ;;  %1873 = vmatprep.mubr.bf16.mxu1 %v3349_v38  ;;  %v1287_v5 = vpop.permute.xlu1 %1286  ;;  %v2199_v38 = vld [vmem:[%s4343_s5 + $0x28] sm:$0xff]  ;;  %v2197_v40 = vld [vmem:[%s4343_s5 + $0x18] sm:$0xff] }
 0x1eb   :  { %v1342_v49 = vmul.bf16 %v1340_v44, %v1327_v47  ;;  %v1303_v6 = vmul.bf16 %v1302_v1, %v1287_v5  ;;  %3188 = vmatprep.subr.mxu0 %v2209_v28 }
 0x1ec   :  { %1801 = vmatmul.mubr.bf16.gmra.mxu0 %v3348_v42  ;;  %v2196_v42 = vld [vmem:[%s4343_s5 + $0x10] sm:$0xff] }
 0x1ed   :  { %3120 = vmatprep.subr.bf16.mxu1 %v1342_v49  ;;  %1938 = vmatprep.mubr.bf16.mxu0 %v3354_v45  ;;  %v2195_v45 = vld [vmem:[%s4343_s5 + $0x8] sm:$0xff] }
 0x1ee   :  { %v1308_v52 = vpop.permute.xlu0 %1307  ;;  %3121 = vmatpush3.bf16.msra.mxu1 %v1342_v49 }
 0x1ef   :  { %3122 = vmatprep.subr.bf16.mxu1 %v1341_v50  ;;  %v1323_v57 = vmul.bf16 %v1321_v54, %v1308_v52 }
 0x1f1   :  { %1874 = vmatmul.mubr.bf16.gmra.mxu1 %v3351_v51 }
 0x1f2   :  { %3123 = vmatpush3.bf16.msra.mxu1 %v1341_v50  ;;  %1881 = vmatprep.mubr.bf16.mxu1 %v3355_v53  ;;  %v1289_v63 = vpop.permute.xlu0 %1288 }
 0x1f3   :  { %3124 = vmatprep.subr.bf16.mxu1 %v1323_v57  ;;  %v1304_v3 = vmul.bf16 %v1302_v1, %v1289_v63 }
 0x1f4   :  { %1939 = vmatmul.mubr.bf16.vlgmr.msra.gmra.mxu0 %v3352_v56 }
 0x1f5   :  { %1946 = vmatprep.mubr.bf16.mxu0 %v3358_v58  ;;  %3189 = vmatpush3.msra.mxu0 %v2209_v28 }
 0x1f6   :  { %3125 = vmatpush3.bf16.msra.mxu1 %v1323_v57  ;;  %3190 = vmatprep.subr.mxu0 %v2208_v29 }
 0x1f7   :  { %3126 = vmatprep.subr.bf16.mxu1 %v1322_v61  ;;  %3191 = vmatpush3.msra.mxu0 %v2208_v29 }
 0x1f8   :  { %3192 = vmatprep.subr.mxu0 %v2207_v30 }
 0x1f9   :  { %1882 = vmatmul.mubr.bf16.gmra.mxu1 %v3357_v62  ;;  %3193 = vmatpush3.msra.mxu0 %v2207_v30 }
 0x1fa   :  { %3127 = vmatpush3.bf16.msra.mxu1 %v1322_v61  ;;  %1889 = vmatprep.mubr.bf16.mxu1 %v3361_v0 }
 0x1fb   :  { %3128 = vmatprep.subr.bf16.mxu1 %v1304_v3  ;;  %3194 = vmatprep.subr.mxu0 %v2206_v31 }
 0x1fc   :  { %1947 = vmatmul.mubr.bf16.gmra.mxu0 %v3360_v2 }
 0x1fd   :  { %1954 = vmatprep.mubr.bf16.mxu0 %v3364_v4  ;;  %3195 = vmatpush3.msra.mxu0 %v2206_v31 }
 0x1fe   :  { %3129 = vmatpush3.bf16.msra.mxu1 %v1304_v3  ;;  %3196 = vmatprep.subr.mxu0 %v2205_v32 }
 0x1ff   :  { %3130 = vmatprep.subr.bf16.mxu1 %v1303_v6  ;;  %3197 = vmatpush3.msra.mxu0 %v2205_v32 }
 0x200   :  { %3198 = vmatprep.subr.mxu0 %v2204_v24 }
 0x201   :  { %1890 = vmatmul.mubr.bf16.gmra.mxu1 %v3363_v43  ;;  %3199 = vmatpush3.msra.mxu0 %v2204_v24 }
 0x202   :  { %3131 = vmatpush3.bf16.msra.mxu1 %v1303_v6  ;;  %1897 = vmatprep.mubr.bf16.mxu1 %v3367_v7 }
 0x203   :  { %3148 = vmatprep.subr.mxu1 %v2209_v28  ;;  %3200 = vmatprep.subr.mxu0 %v2203_v34 }
 0x204   :  { %1955 = vmatmul.mubr.bf16.gmra.mxu0 %v3366_v8 }
 0x205   :  { %1962 = vmatprep.mubr.bf16.mxu0 %v3370_v9  ;;  %3201 = vmatpush3.msra.mxu0 %v2203_v34 }
 0x206   :  { %3202 = vmatprep.subr.mxu0 %v2202_v35 }
 0x207   :  { %3203 = vmatpush3.msra.mxu0 %v2202_v35 }
 0x208   :  { %3204 = vmatprep.subr.mxu0 %v2201_v36 }
 0x209   :  { %1898 = vmatmul.mubr.bf16.gmra.mxu1 %v3369_v10  ;;  %3205 = vmatpush3.msra.mxu0 %v2201_v36 }
 0x20a   :  { %3132 = vmatprep.mubr.msk.bf16.mxu1 %vm1687_vm0, %v3373_v11  ;;  %3206 = vmatprep.subr.mxu0 %v2200_v37 }
 0x20b   :  { %3207 = vmatpush3.msra.mxu0 %v2200_v37 }
 0x20c   :  { %1963 = vmatmul.mubr.bf16.gmra.mxu0 %v3372_v12  ;;  %3208 = vmatprep.subr.mxu0 %v2199_v38 }
 0x20d   :  { %1970 = vmatprep.mubr.bf16.mxu0 %v3375_v13  ;;  %3209 = vmatpush3.msra.mxu0 %v2199_v38 }
 0x20e   :  { %3210 = vmatprep.subr.mxu0 %v2198_v39 }
 0x20f   :  { %3211 = vmatpush3.msra.mxu0 %v2198_v39 }
 0x210   :  { %3212 = vmatprep.subr.mxu0 %v2197_v40 }
 0x211   :  { %3133 = vmatmul.mubr.msk.bf16.vlgmr.msra.gmra.mxu1 %vm1687_vm0, %v3374_v14  ;;  %3213 = vmatpush3.msra.mxu0 %v2197_v40 }
 0x212   :  { %3136 = vmatprep.mubr.msk.bf16.mxu1 %vm1687_vm0, %v3378_v15  ;;  %3149 = vmatpush3.msra.mxu1 %v2209_v28 }
 0x213   :  { %3150 = vmatprep.subr.mxu1 %v2208_v29  ;;  %3214 = vmatprep.subr.mxu0 %v2196_v42 }
 0x214   :  { %1971 = vmatmul.mubr.bf16.gmra.mxu0 %v3377_v16  ;;  %3151 = vmatpush3.msra.mxu1 %v2208_v29 }
 0x215   :  { %1978 = vmatprep.mubr.bf16.mxu0 %v3380_v17  ;;  %3152 = vmatprep.subr.mxu1 %v2207_v30 }
 0x216   :  { %3153 = vmatpush3.msra.mxu1 %v2207_v30  ;;  %3215 = vmatpush3.msra.mxu0 %v2196_v42 }
 0x217   :  { %3154 = vmatprep.subr.mxu1 %v2206_v31  ;;  %3216 = vmatprep.subr.mxu0 %v2195_v45 }
 0x218   :  { %3155 = vmatpush3.msra.mxu1 %v2206_v31  ;;  %3217 = vmatpush3.msra.mxu0 %v2195_v45 }
 0x219   :  { %3137 = vmatmul.mubr.msk.bf16.gmra.mxu1 %vm1687_vm0, %v3379_v18  ;;  %3156 = vmatprep.subr.mxu1 %v2205_v32 }
 0x21a   :  { %3140 = vmatprep.mubr.msk.bf16.mxu1 %vm1687_vm0, %v3383_v19  ;;  %3157 = vmatpush3.msra.mxu1 %v2205_v32 }
 0x21b   :  { %3158 = vmatprep.subr.mxu1 %v2204_v24  ;;  %3218 = vmatprep.subr.mxu0 %v2194_v48 }
 0x21c   :  { %1979 = vmatmul.mubr.bf16.gmra.mxu0 %v3382_v20  ;;  %3159 = vmatpush3.msra.mxu1 %v2204_v24 }
 0x21d   :  { %1986 = vmatprep.mubr.bf16.mxu0 %v3385_v33  ;;  %3160 = vmatprep.subr.mxu1 %v2203_v34 }
 0x21e   :  { %3161 = vmatpush3.msra.mxu1 %v2203_v34  ;;  %3219 = vmatpush3.msra.mxu0 %v2194_v48 }
 0x21f   :  { %3162 = vmatprep.subr.mxu1 %v2202_v35 }
 0x220   :  { %3163 = vmatpush3.msra.mxu1 %v2202_v35 }
 0x221   :  { %3141 = vmatmul.mubr.msk.bf16.gmra.mxu1 %vm1687_vm0, %v3384_v21  ;;  %3164 = vmatprep.subr.mxu1 %v2201_v36 }
 0x222   :  { %3144 = vmatprep.mubr.msk.bf16.mxu1 %vm1687_vm0, %v3388_v22  ;;  %3165 = vmatpush3.msra.mxu1 %v2201_v36 }
 0x223   :  { %3166 = vmatprep.subr.mxu1 %v2200_v37 }
 0x224   :  { %1987 = vmatmul.mubr.bf16.gmra.mxu0 %v3387_v23  ;;  %3167 = vmatpush3.msra.mxu1 %v2200_v37 }
 0x225   :  { %1994 = vmatprep.mubr.bf16.mxu0 %v3390_v25  ;;  %3168 = vmatprep.subr.mxu1 %v2199_v38 }
 0x226   :  { %3169 = vmatpush3.msra.mxu1 %v2199_v38 }
 0x227   :  { %3170 = vmatprep.subr.mxu1 %v2198_v39 }
 0x228   :  { %3171 = vmatpush3.msra.mxu1 %v2198_v39 }
 0x229   :  { %3145 = vmatmul.mubr.msk.bf16.gmra.mxu1 %vm1687_vm0, %v3389_v26  ;;  %3172 = vmatprep.subr.mxu1 %v2197_v40 }
 0x22a   :  { %3173 = vmatpush3.msra.mxu1 %v2197_v40 }
 0x22b   :  { %3174 = vmatprep.subr.mxu1 %v2196_v42 }
 0x22c   :  { %1995 = vmatmul.mubr.bf16.gmra.mxu0 %v3392_v27  ;;  %3175 = vmatpush3.msra.mxu1 %v2196_v42 }
 0x22d   :  { %3176 = vmatprep.subr.mxu1 %v2195_v45 }
 0x22e   :  { %3177 = vmatpush3.msra.mxu1 %v2195_v45 }
 0x22f   :  { %3178 = vmatprep.subr.mxu1 %v2194_v48 }
 0x230   :  { %3179 = vmatpush3.msra.mxu1 %v2194_v48 }
 0x274   :  { %v2891_v41 = vpop.f32.mrf.mxu0 }
 0x276   :  { %v2892_v44 = vpop.f32.mrf.mxu0 }
 0x277   :  { %v2893_v46 = vadd.f32 %v2892_v44, %v2891_v41 }
 0x278   :  { %v2894_v47 = vpop.f32.mrf.mxu0 }
 0x27a   :  { %v2895_v49 = vpop.f32.mrf.mxu0 }
 0x27b   :  { %v4096_v50 = vadd.f32 %v2895_v49, %v2894_v47 }
 0x27c   :  { %v2897_v51 = vpop.f32.mrf.mxu0 }
 0x27e   :  { %v2898_v52 = vpop.f32.mrf.mxu0 }
 0x27f   :  { %v4098_v53 = vadd.f32 %v2898_v52, %v2897_v51 }
 0x280   :  { %v2900_v54 = vpop.f32.mrf.mxu0 }
 0x282   :  { %v2901_v55 = vpop.f32.mrf.mxu0 }
 0x283   :  { %v4100_v56 = vadd.f32 %v2901_v55, %v2900_v54 }
 0x284   :  { %v2903_v57 = vpop.f32.mrf.mxu0 }
 0x286   :  { %v2904_v58 = vpop.f32.mrf.mxu0 }
 0x287   :  { %v4102_v59 = vadd.f32 %v2904_v58, %v2903_v57 }
 0x288   :  { %v2906_v60 = vpop.f32.mrf.mxu0 }
 0x28a   :  { %v2907_v61 = vpop.f32.mrf.mxu0 }
 0x28b   :  { %v4104_v62 = vadd.f32 %v2907_v61, %v2906_v60 }
 0x28c   :  { %v2909_v63 = vpop.f32.mrf.mxu0 }
 0x28e   :  { %v2910_v0 = vpop.f32.mrf.mxu0 }
 0x28f   :  { %v4106_v1 = vadd.f32 %v2910_v0, %v2909_v63 }
 0x290   :  { %v2912_v2 = vpop.f32.mrf.mxu0 }
 0x291   :  { %v2955_v3 = vpop.f32.mrf.mxu1 }
 0x292   :  { %v2913_v4 = vpop.f32.mrf.mxu0 }
 0x293   :  { %v4108_v5 = vadd.f32 %v2913_v4, %v2912_v2  ;;  %v2956_v6 = vpop.f32.mrf.mxu1 }
 0x294   :  { %v2957_v43 = vadd.f32 %v2956_v6, %v2955_v3  ;;  %v2915_v7 = vpop.f32.mrf.mxu0 }
 0x295   :  { %v4110_v8 = vpop.f32.mrf.mxu1 }
 0x296   :  { %v4112_v9 = vadd.f32 %v2957_v43, %v2893_v46  ;;  %v2916_v10 = vpop.f32.mrf.mxu0 }
 0x297   :  { %v4114_v11 = vadd.f32 %v2916_v10, %v2915_v7  ;;  %v2959_v12 = vpop.f32.mrf.mxu1 }
 0x298   :  { %v2918_v13 = vpop.f32.mrf.mxu0 }
 0x299   :  { %v2961_v14 = vpop.f32.mrf.mxu1 }
 0x29a   :  { %v2919_v15 = vpop.f32.mrf.mxu0 }
 0x29b   :  { %v4116_v16 = vadd.f32 %v2919_v15, %v2918_v13  ;;  %v2962_v17 = vpop.f32.mrf.mxu1 }
 0x29c   :  { %v2921_v18 = vpop.f32.mrf.mxu0 }
 0x29d   :  { %v2964_v19 = vpop.f32.mrf.mxu1 }
 0x29e   :  { %v2922_v20 = vpop.f32.mrf.mxu0 }
 0x29f   :  { %v4118_v33 = vadd.f32 %v2922_v20, %v2921_v18  ;;  %v2965_v21 = vpop.f32.mrf.mxu1 }
 0x2a0   :  { %v4120_v22 = vpop.f32.mrf.mxu0 }
 0x2a1   :  { %v4122_v23 = vpop.f32.mrf.mxu1 }
 0x2a2   :  { %v4124_v25 = vpop.f32.mrf.mxu0 }
 0x2a3   :  { %v4126_v26 = vpop.f32.mrf.mxu1 }
 0x2a4   :  { %v2927_v27 = vpop.f32.mrf.mxu0 }
 0x2a5   :  { %v4128_v28 = vpop.f32.mrf.mxu1 }
 0x2a6   :  { %v2928_v29 = vpop.f32.mrf.mxu0 }
 0x2a7   :  { %v4130_v30 = vadd.f32 %v2928_v29, %v2927_v27  ;;  %v4132_v31 = vpop.f32.mrf.mxu1  ;;  %v2963_v27 = vadd.f32 %v2962_v17, %v2961_v14  ;;  %v2966_v29 = vadd.f32 %v2965_v21, %v2964_v19 }
 0x2a8   :  { %v4134_v32 = vpop.f32.mrf.mxu0 }
 0x2a9   :  { %4348 = vst [vmem:[#allocation2_spill] sm:$0xff] %v4130_v30  ;;  %4349 = vst [vmem:[#allocation3_spill] sm:$0xff] %v4134_v32  ;;  %v2973_v24 = vpop.f32.mrf.mxu1 }
 0x2aa   :  { %v4136_v34 = vpop.f32.mrf.mxu0 }
 0x2ab   :  { %4350 = vst [vmem:[#allocation4_spill] sm:$0xff] %v4136_v34  ;;  %v2974_v35 = vpop.f32.mrf.mxu1 }
 0x2ac   :  { %v4138_v36 = vpop.f32.mrf.mxu0 }
 0x2ad   :  { %4351 = vst [vmem:[#allocation5_spill] sm:$0xff] %v4138_v36  ;;  %v2976_v37 = vpop.f32.mrf.mxu1 }
 0x2ae   :  { %v4140_v38 = vpop.f32.mrf.mxu0 }
 0x2af   :  { %4352 = vst [vmem:[#allocation6_spill] sm:$0xff] %v4140_v38  ;;  %v2977_v39 = vpop.f32.mrf.mxu1  ;;  %v2960_v38 = vadd.f32 %v2959_v12, %v4110_v8 }
 0x2b0   :  { %v4142_v40 = vpop.f32.mrf.mxu0 }
 0x2b1   :  { %4353 = vst [vmem:[#allocation7_spill] sm:$0xff] %v4142_v40  ;;  %v4144_v41 = vpop.f32.mrf.mxu1  ;;  %v1847_v14 = vadd.f32 %v2960_v38, %v4096_v50  ;;  %v2972_v50 = vadd.f32 %v4132_v31, %v4128_v28 }
 0x2b2   :  { %v4146_v42 = vpop.f32.mrf.mxu0 }
 0x2b3   :  { %4354 = vst [vmem:[#allocation8_spill] sm:$0xff] %v4146_v42  ;;  %v4148_v44 = vpop.f32.mrf.mxu1 }
 0x2b4   :  { %v3019_v45 = vpop.f32.mrf.mxu0 }
 0x2b5   :  { %v4150_v46 = vpop.f32.mrf.mxu1 }
 0x2b6   :  { %v3020_v47 = vpop.f32.mrf.mxu0 }
 0x2b7   :  { %v4152_v48 = vpop.f32.mrf.mxu1 }
 0x2b8   :  { %v3022_v49 = vpop.f32.mrf.mxu0 }
 0x2b9   :  { %v4154_v51 = vpop.f32.mrf.mxu1 }
 0x2ba   :  { %v3023_v52 = vpop.f32.mrf.mxu0 }
 0x2bb   :  { %v4156_v54 = vpop.f32.mrf.mxu1 }
 0x2bc   :  { %v3025_v55 = vpop.f32.mrf.mxu0 }
 0x2bd   :  { %v4158_v57 = vpop.f32.mrf.mxu1 }
 0x2be   :  { %v3026_v58 = vpop.f32.mrf.mxu0 }
 0x2bf   :  { %v4160_v60 = vpop.f32.mrf.mxu1  ;;  %v3027_v36 = vadd.f32 %v3026_v58, %v3025_v55 }
 0x2c0   :  { %v3028_v61 = vpop.f32.mrf.mxu0 }
 0x2c1   :  { %v4162_v63 = vpop.f32.mrf.mxu1 }
 0x2c2   :  { %4355 = vst [vmem:[#allocation9_spill] sm:$0xff] %v4162_v63  ;;  %v3029_v0 = vpop.f32.mrf.mxu0 }
 0x2c3   :  { %v4164_v2 = vpop.f32.mrf.mxu1  ;;  %v3030_v30 = vadd.f32 %v3029_v0, %v3028_v61 }
 0x2c4   :  { %4356 = vst [vmem:[#allocation10_spill] sm:$0xff] %v4164_v2  ;;  %v3031_v3 = vpop.f32.mrf.mxu0 }
 0x2c5   :  { %v4166_v4 = vpop.f32.mrf.mxu1 }
 0x2c6   :  { %4357 = vst [vmem:[#allocation11_spill] sm:$0xff] %v4166_v4  ;;  %v3032_v6 = vpop.f32.mrf.mxu0  ;;  %v3021_v4 = vadd.f32 %v3020_v47, %v3019_v45  ;;  %v2969_v45 = vadd.f32 %v4126_v26, %v4122_v23 }
 0x2c7   :  { %v4168_v43 = vpop.f32.mrf.mxu1  ;;  %v3033_v23 = vadd.f32 %v3032_v6, %v3031_v3 }
 0x2c8   :  { %4358 = vst [vmem:[#allocation12_spill] sm:$0xff] %v4168_v43  ;;  %v3034_v7 = vpop.f32.mrf.mxu0  ;;  %v1852_v43 = vadd.f32 %v2963_v27, %v4098_v53  ;;  %v1941_v55 = vadd.f32 %v3021_v4, %v4112_v9  ;;  %v2990_v4 = vadd.f32 %v4160_v60, %v4158_v57 }
 0x2c9   :  { %v4170_v10 = vpop.f32.mrf.mxu1 }
 0x2ca   :  { %4359 = vst [vmem:[#allocation13_spill] sm:$0xff] %v4170_v10  ;;  %v3035_v13 = vpop.f32.mrf.mxu0  ;;  %v1855_v10 = vadd.f32 %v2966_v29, %v4100_v56  ;;  %v1949_v17 = vadd.f32 %v3027_v36, %v1852_v43 }
 0x2cb   :  { %v4172_v15 = vpop.f32.mrf.mxu1  ;;  %v3036_v26 = vadd.f32 %v3035_v13, %v3034_v7  ;;  %v2984_v7 = vadd.f32 %v4152_v48, %v4150_v46 }
 0x2cc   :  { %4360 = vst [vmem:[#allocation14_spill] sm:$0xff] %v4172_v15  ;;  %v3037_v18 = vpop.f32.mrf.mxu0  ;;  %v3024_v15 = vadd.f32 %v3023_v52, %v3022_v49  ;;  %v1952_v21 = vadd.f32 %v3030_v30, %v1855_v10  ;;  %v1863_v49 = vadd.f32 %v2972_v50, %v4104_v62  ;;  %v2987_v52 = vadd.f32 %v4156_v54, %v4154_v51 }
 0x2cd   :  { %v4174_v20 = vpop.f32.mrf.mxu1  ;;  %v2981_v62 = vadd.f32 %v4148_v44, %v4144_v41 }
 0x2ce   :  { %4361 = vst [vmem:[#allocation15_spill] sm:$0xff] %v4174_v20  ;;  %v3038_v42 = vpop.f32.mrf.mxu0  ;;  %v2978_v20 = vadd.f32 %v2977_v39, %v2976_v37  ;;  %v1944_v56 = vadd.f32 %v3024_v15, %v1847_v14  ;;  %v2926_v15 = vadd.f32 %v4124_v25, %v4120_v22  ;;  %v1884_v41 = vadd.f32 %v2987_v52, %v4118_v33  ;;  %v4363_v25 = vld [vmem:[#allocation9_spill] sm:$0xff] }
 0x2cf   :  { %v4176_v40 = vpop.f32.mrf.mxu1  ;;  %v3039_v36 = vadd.f32 %v3038_v42, %v3037_v18  ;;  %v1860_v42 = vadd.f32 %v2969_v45, %v4102_v59  ;;  %v1960_v59 = vadd.f32 %v3036_v26, %v1863_v49  ;;  %v1876_v14 = vadd.f32 %v2981_v62, %v4114_v11 }
 0x2d0   :  { %4362 = vst [vmem:[#allocation16_spill] sm:$0xff] %v4176_v40  ;;  %v3040_v34 = vpop.f32.mrf.mxu0  ;;  %v2975_v40 = vadd.f32 %v2974_v35, %v2973_v24  ;;  %v1871_v47 = vadd.f32 %v2978_v20, %v4108_v5  ;;  %v1887_v18 = vadd.f32 %v2990_v4, %v2926_v15  ;;  %v1879_v22 = vadd.f32 %v2984_v7, %v4116_v16  ;;  %v4372_v7 = vld [vmem:[#allocation5_spill] sm:$0xff] }
 0x2d1   :  { %v3134_v32 = vpop.f32.mrf.mxu1  ;;  %v1957_v0 = vadd.f32 %v3033_v23, %v1860_v42 }
 0x2d2   :  { %v3041_v2 = vpop.f32.mrf.mxu0  ;;  %v4182_v12 = vadd.f32 %v3134_v32, %v1949_v17  ;;  %v1868_v37 = vadd.f32 %v2975_v40, %v4106_v1  ;;  %v4364_v17 = vld [vmem:[#allocation10_spill] sm:$0xff] }
 0x2d3   :  { %v2037_v63 = vpop.f32.mrf.mxu1  ;;  %v3042_v30 = vadd.f32 %v3041_v2, %v3040_v34  ;;  %v4371_v52 = vld [vmem:[#allocation14_spill] sm:$0xff] }
 0x2d4   :  { %v3043_v19 = vpop.f32.mrf.mxu0  ;;  %v4191_v24 = vadd.f32 %v2037_v63, %v1941_v55  ;;  %v1965_v1 = vadd.f32 %v3039_v36, %v1868_v37  ;;  %v4367_v37 = vld [vmem:[#allocation3_spill] sm:$0xff] }
 0x2d5   :  { %v3135_v8 = vpop.f32.mrf.mxu1  ;;  %v1968_v40 = vadd.f32 %v3042_v30, %v1871_v47 }
 0x2d6   :  { %v4185_v58 = vadd.f32 %v3135_v8, %v1952_v21  ;;  %v3044_v53 = vpop.f32.mrf.mxu0  ;;  %v2180_v21 = vadd.f32 %v4182_v12, %v4191_v24 }
 0x2d7   :  { %v2040_v38 = vpop.f32.mrf.mxu1  ;;  %v3045_v57 = vadd.f32 %v3044_v53, %v3043_v19  ;;  %v2993_v19 = vadd.f32 %v4364_v17, %v4363_v25  ;;  %v4365_v53 = vld [vmem:[#allocation11_spill] sm:$0xff] }
 0x2d8   :  { %v2724_v32 = vpack.c.bf16 %v4185_v58, %v4182_v12  ;;  %v4195_v35 = vadd.f32 %v2040_v38, %v1944_v56  ;;  %v3046_v9 = vpop.f32.mrf.mxu0  ;;  %v4366_v56 = vld [vmem:[#allocation12_spill] sm:$0xff]  ;;  %v4376_v17 = vld [vmem:[#allocation7_spill] sm:$0xff] }
 0x2d9   :  { %v3138_v39 = vpop.f32.mrf.mxu1  ;;  %v2996_v45 = vadd.f32 %v4366_v56, %v4365_v53  ;;  %v1973_v50 = vadd.f32 %v3045_v57, %v1876_v14 }
 0x2da   :  { %2756 = vst [vmem:[%s4344_s6 + $0x8] sm:$0xff] %v2724_v32   ;;  %v2719_v28 = vpack.c.bf16 %v4195_v35, %v4191_v24  ;;  %v3047_v31 = vpop.f32.mrf.mxu0  ;;  %v4211_v63 = vadd.f32 %v3138_v39, %v1965_v1  ;;  %v4368_v39 = vld [vmem:[#allocation4_spill] sm:$0xff]  ;;  %v2181_v42 = vadd.f32 %v4185_v58, %v4195_v35 }
 0x2db   :  { %v2053_v34 = vpop.f32.mrf.mxu1  ;;  %v3048_v60 = vadd.f32 %v3047_v31, %v3046_v9  ;;  %v2932_v47 = vadd.f32 %v4368_v39, %v4367_v37  ;;  %v4369_v31 = vld [vmem:[#allocation2_spill] sm:$0xff] }
 0x2dc   :  { %2720 = vst [vmem:[%s4344_s6] sm:$0xff] %v2719_v28   ;;  %v3049_v5 = vpop.f32.mrf.mxu0  ;;  %v4221_v51 = vadd.f32 %v2053_v34, %v1957_v0  ;;  %v1892_v34 = vadd.f32 %v2993_v19, %v4369_v31  ;;  %v4377_v19 = vld [vmem:[#allocation8_spill] sm:$0xff] }
 0x2dd   :  { %v3139_v61 = vpop.f32.mrf.mxu1  ;;  %v1976_v36 = vadd.f32 %v3048_v60, %v1879_v22 }
 0x2de   :  { %v4213_v2 = vadd.f32 %v3139_v61, %v1968_v40  ;;  %v3050_v3 = vpop.f32.mrf.mxu0  ;;  %v2182_v16 = vadd.f32 %v2180_v21, %v4221_v51  ;;  %v4370_v40 = vld [vmem:[#allocation13_spill] sm:$0xff]  ;;  %v2938_v21 = vadd.f32 %v4377_v19, %v4376_v17 }
 0x2df   :  { %v3051_v6 = vadd.f32 %v3050_v3, %v3049_v5  ;;  %v2056_v43 = vpop.f32.mrf.mxu1  ;;  %v1895_v5 = vadd.f32 %v2996_v45, %v2932_v47  ;;  %v2999_v61 = vadd.f32 %v4371_v52, %v4370_v40 }
 0x2e0   :  { %v2734_v54 = vpack.c.bf16 %v4213_v2, %v4211_v63  ;;  %v4225_v10 = vadd.f32 %v2056_v43, %v1960_v59  ;;  %v3052_v13 = vpop.f32.mrf.mxu0  ;;  %v2184_v62 = vadd.f32 %v2182_v16, %v4211_v63 }
 0x2e1   :  { %v3142_v44 = vpop.f32.mrf.mxu1  ;;  %v1981_v20 = vadd.f32 %v3051_v6, %v1884_v41 }
 0x2e2   :  { %2758 = vst [vmem:[%s4344_s6 + $0x18] sm:$0xff] %v2734_v54   ;;  %v2729_v46 = vpack.c.bf16 %v4225_v10, %v4221_v51  ;;  %v3053_v48 = vpop.f32.mrf.mxu0  ;;  %v2183_v59 = vadd.f32 %v2181_v42, %v4225_v10  ;;  %v4373_v54 = vld [vmem:[#allocation6_spill] sm:$0xff] }
 0x2e3   :  { %v3054_v27 = vadd.f32 %v3053_v48, %v3052_v13  ;;  %v2069_v29 = vpop.f32.mrf.mxu1  ;;  %v4247_v38 = vadd.f32 %v3142_v44, %v1981_v20  ;;  %v2935_v13 = vadd.f32 %v4373_v54, %v4372_v7  ;;  %v4374_v48 = vld [vmem:[#allocation15_spill] sm:$0xff] }
 0x2e4   :  { %2757 = vst [vmem:[%s4344_s6 + $0x10] sm:$0xff] %v2729_v46   ;;  %v3055_v33 = vpop.f32.mrf.mxu0  ;;  %v4253_v23 = vadd.f32 %v2069_v29, %v1973_v50 }
 0x2e5   :  { %v1984_v8 = vadd.f32 %v3054_v27, %v1887_v18  ;;  %v3143_v55 = vpop.f32.mrf.mxu1  ;;  %v1900_v60 = vadd.f32 %v2999_v61, %v2935_v13  ;;  %v4375_v18 = vld [vmem:[#allocation16_spill] sm:$0xff]  ;;  %v2185_v27 = vadd.f32 %v2183_v59, %v4213_v2 }
 0x2e6   :  { %v3056_v11 = vpop.f32.mrf.mxu0  ;;  %v2186_v41 = vadd.f32 %v2184_v62, %v4253_v23  ;;  %v3002_v20 = vadd.f32 %v4375_v18, %v4374_v48 }
 0x2e7   :  { %v4249_v30 = vadd.f32 %v3143_v55, %v1984_v8  ;;  %v3057_v32 = vadd.f32 %v3056_v11, %v3055_v33  ;;  %v2072_v9 = vpop.f32.mrf.mxu1 }
 0x2e8   :  { %v4255_v26 = vadd.f32 %v2072_v9, %v1976_v36  ;;  %v3058_v28 = vpop.f32.mrf.mxu0  ;;  %v2188_v55 = vadd.f32 %v2186_v41, %v4247_v38  ;;  %v1903_v50 = vadd.f32 %v3002_v20, %v2938_v21 }
 0x2e9   :  { %v2744_v49 = vpack.c.bf16 %v4249_v30, %v4247_v38  ;;  %v3146_v1 = vpop.f32.mrf.mxu1  ;;  %v1989_v6 = vadd.f32 %v3057_v32, %v1892_v34  ;;  %v2210_v34 = vld [vmem:[%s4345_s4] sm:$0x3] }
 0x2ea   :  { %v2739_v0 = vpack.c.bf16 %v4255_v26, %v4253_v23  ;;  %v3059_v3 = vpop.f32.mrf.mxu0  ;;  %v2187_v8 = vadd.f32 %v2185_v27, %v4255_v26  ;;  %3183 = vmatprep.subr.msk.mxu1 %vm2295_vm1, %v2210_v34 }
 0x2eb   :  { %2760 = vst [vmem:[%s4344_s6 + $0x28] sm:$0xff] %v2744_v49   ;;  %v3060_v4 = vadd.f32 %v3059_v3, %v3058_v28  ;;  %v2085_v43 = vpop.f32.mrf.mxu1 }
 0x2ec   :  { %2759 = vst [vmem:[%s4344_s6 + $0x20] sm:$0xff] %v2739_v0   ;;  %v3061_v15 = vpop.f32.mrf.mxu0  ;;  %v4280_v29 = vadd.f32 %v2085_v43, %v1989_v6  ;;  %v2189_v32 = vadd.f32 %v2187_v8, %v4249_v30 }
 0x2ed   :  { %v3147_v44 = vpop.f32.mrf.mxu1  ;;  %v1992_v57 = vadd.f32 %v3060_v4, %v1895_v5 }
 0x2ee   :  { %v3062_v46 = vpop.f32.mrf.mxu0  ;;  %v2190_v11 = vadd.f32 %v2188_v55, %v4280_v29 }
 0x2ef   :  { %v3063_v14 = vadd.f32 %v3062_v46, %v3061_v15  ;;  %v2088_v22 = vpop.f32.mrf.mxu1 }
 0x2f0   :  { %v4282_v33 = vadd.f32 %v2088_v22, %v1992_v57  ;;  %v3064_v25 = vpop.f32.mrf.mxu0 }
 0x2f1   :  { %v1997_v53 = vadd.f32 %v3063_v14, %v1900_v60 }
 0x2f2   :  { %v2749_v56 = vpack.c.bf16 %v4282_v33, %v4280_v29  ;;  %v3065_v45 = vpop.f32.mrf.mxu0  ;;  %v2191_v39 = vadd.f32 %v2189_v32, %v4282_v33 }
 0x2f3   :  { %v4291_v36 = vadd.f32 %v3146_v1, %v1997_v53  ;;  %v3066_v16 = vadd.f32 %v3065_v45, %v3064_v25 }
 0x2f4   :  { %2761 = vst [vmem:[%s4344_s6 + $0x30] sm:$0xff] %v2749_v56  }
 0x2f5   :  { %v2000_v9 = vadd.f32 %v3066_v16, %v1903_v50  ;;  %v2192_v37 = vadd.f32 %v2190_v11, %v4291_v36 }
 0x2f7   :  { %v2097_v47 = vadd.f32 %v3147_v44, %v2000_v9  ;;  %3180 = vmatprep.mubr.f32.mxu1 %v2192_v37 }
 0x2f9   :  { %v2754_v28 = vpack.c.bf16 %v2097_v47, %v4291_v36  ;;  %v2193_v31 = vadd.f32 %v2191_v39, %v2097_v47 }
 0x2fb   :  { %2762 = vst [vmem:[%s4344_s6 + $0x38] sm:$0xff] %v2754_v28   ;;  %3181 = vmatmul.mubr.f32.vlgmr.msra.gmra.mxu1 %v2193_v31 }
 0x2fc   :  { %3184 = vmatpush3.msk.msra.mxu1 %vm2295_vm1, %v2210_v34 }
 0x3bb   :  { %v3182_v42 = vpop.f32.mrf.mxu1 }
 0x3bc   :  { %2496 = vst.msk [vmem:[%s4346_s7 + $0x8] sm:$0xff] %vm2288_vm2, %v3182_v42  ;;  %v2287_v5 = vmul.f32 0.001953125, %v3182_v42 }
 0x3bd   :  { %v2277_v49 = vpop.f32.mrf.mxu1 }
 0x3be   :  { %v2286_v1 = vmul.f32 0.001953125, %v2277_v49  ;;  %2495 = vst.msk [vmem:[%s4346_s7] sm:$0xff] %vm2288_vm2, %v2277_v49 }
 0x3c0   :  { %3185 = vmatprep.mubr.msk.f32.mxu1 %vm2288_vm2, %v2286_v1 }
 0x3c1   :  { %3186 = vmatmul.mubr.msk.f32.vlgmr.msra.gmra.mxu1 %vm2288_vm2, %v2287_v5 }
 0x481   :  { %v3187_v40 = vpop.f32.mrf.mxu1 }
 0x482   :  { %v2375_v52 = vsub.f32 %v4195_v35, %v3187_v40  ;;  %v2379_v61 = vsub.f32 %v4185_v58, %v3187_v40  ;;  %v2385_v0 = vsub.f32 %v4225_v10, %v3187_v40  ;;  %v2391_v4 = vsub.f32 %v4213_v2, %v3187_v40 }
 0x483   :  { %v2365_v3 = vpop.f32.mrf.mxu1  ;;  %v2397_v13 = vsub.f32 %v4255_v26, %v3187_v40  ;;  %v2403_v44 = vsub.f32 %v4249_v30, %v3187_v40  ;;  %v2409_v20 = vsub.f32 %v4282_v33, %v3187_v40  ;;  %v2415_v21 = vsub.f32 %v2097_v47, %v3187_v40 }
 0x484   :  { %v2377_v59 = vmul.f32 %v2375_v52, %v2375_v52  ;;  %v2381_v62 = vmul.f32 %v2379_v61, %v2379_v61  ;;  %v2374_v6 = vsub.f32 %v4191_v24, %v2365_v3  ;;  %v2378_v43 = vsub.f32 %v4182_v12, %v2365_v3 }
 0x485   :  { %v2384_v7 = vsub.f32 %v4221_v51, %v2365_v3  ;;  %v2387_v15 = vmul.f32 %v2385_v0, %v2385_v0  ;;  %v2390_v58 = vsub.f32 %v4211_v63, %v2365_v3  ;;  %v2393_v10 = vmul.f32 %v2391_v4, %v2391_v4 }
 0x486   :  { %v2383_v54 = vadd.f32 %v2381_v62, %v2377_v59  ;;  %v2376_v35 = vmul.f32 %v2374_v6, %v2374_v6  ;;  %v2380_v41 = vmul.f32 %v2378_v43, %v2378_v43  ;;  %v2396_v2 = vsub.f32 %v4253_v23, %v2365_v3 }
 0x487   :  { %v2386_v60 = vmul.f32 %v2384_v7, %v2384_v7  ;;  %v2402_v12 = vsub.f32 %v4247_v38, %v2365_v3  ;;  %v2392_v51 = vmul.f32 %v2390_v58, %v2390_v58  ;;  %v2399_v18 = vmul.f32 %v2397_v13, %v2397_v13 }
 0x488   :  { %v2382_v57 = vadd.f32 %v2380_v41, %v2376_v35  ;;  %v2389_v24 = vadd.f32 %v2387_v15, %v2383_v54  ;;  %v2408_v26 = vsub.f32 %v4280_v29, %v2365_v3  ;;  %v2398_v63 = vmul.f32 %v2396_v2, %v2396_v2 }
 0x489   :  { %v2405_v22 = vmul.f32 %v2403_v44, %v2403_v44  ;;  %v2404_v25 = vmul.f32 %v2402_v12, %v2402_v12  ;;  %v2414_v17 = vsub.f32 %v4291_v36, %v2365_v3  ;;  %v2411_v19 = vmul.f32 %v2409_v20, %v2409_v20 }
 0x48a   :  { %v2388_v46 = vadd.f32 %v2386_v60, %v2382_v57  ;;  %v2395_v48 = vadd.f32 %v2393_v10, %v2389_v24  ;;  %v2410_v8 = vmul.f32 %v2408_v26, %v2408_v26  ;;  %v2417_v45 = vmul.f32 %v2415_v21, %v2415_v21 }
 0x48b   :  { %v2416_v56 = vmul.f32 %v2414_v17, %v2414_v17 }
 0x48c   :  { %v2394_v27 = vadd.f32 %v2392_v51, %v2388_v46  ;;  %v2401_v14 = vadd.f32 %v2399_v18, %v2395_v48 }
 0x48e   :  { %v2400_v30 = vadd.f32 %v2398_v63, %v2394_v27  ;;  %v2407_v23 = vadd.f32 %v2405_v22, %v2401_v14 }
 0x490   :  { %v2406_v38 = vadd.f32 %v2404_v25, %v2400_v30  ;;  %v2413_v55 = vadd.f32 %v2411_v19, %v2407_v23 }
 0x492   :  { %v2412_v53 = vadd.f32 %v2410_v8, %v2406_v38  ;;  %v2419_v50 = vadd.f32 %v2417_v45, %v2413_v55 }
 0x494   :  { %v2418_v29 = vadd.f32 %v2416_v56, %v2412_v53 }
 0x496   :  { %3220 = vmatprep.mubr.f32.mxu0 %v2418_v29 }
 0x497   :  { %3221 = vmatmul.mubr.f32.vlgmr.msra.gmra.mxu0 %v2419_v50 }
 0x557   :  { %v3222_v33 = vpop.f32.mrf.mxu0 }
 0x558   :  { %2498 = vst.msk [vmem:[%s4347_s8 + $0x8] sm:$0xff] %vm2288_vm2, %v3222_v33 }
 0x559   :  { %v2486_v11 = vpop.f32.mrf.mxu0 }
 0x55a   :  { %2497 = vst.msk [vmem:[%s4347_s8] sm:$0xff] %vm2288_vm2, %v2486_v11 }

</bundles_post_ra>
